<compile_context>
chip_gen: v6e
topology: v6e:2x2x1
jax: 0.10.0
libtpu: 0.0.40
codegen_flags: <defaults>
</compile_context>

<pallas_src>
import math
from functools import partial

import jax
import jax.numpy as jnp
from jax.experimental import pallas as pl
from jax.experimental.pallas import tpu as pltpu


# ----------------------------------------------------------------------------
# Fused kernel: one grid step = (one batch block, one layer)
# ----------------------------------------------------------------------------
def _stack_kernel(x_ref, g1, b1, wq, bq, wk, bk, wv, bv, wo, bo,
                  g2, b2, wfc, bfc, wpr, bpr, out_ref, acc_ref, *, n_head):
    layer = pl.program_id(1)
    Bt, L, D = x_ref.shape
    H = n_head
    hd = D // H
    R = Bt * L
    cdt = wq.dtype                               # matmul input dtype (bf16 or f32)

    @pl.when(layer == 0)
    def _():                                     # load activations once per batch block
        acc_ref[...] = x_ref[...].astype(jnp.float32)

    x = acc_ref[...].reshape(R, D)               # (R, D) f32, batch folded into matmul M

    def layer_norm(v, g_ref, b_ref):             # stats in f32 (matches torch fp32 LN)
        mu = jnp.mean(v, axis=-1, keepdims=True)
        var = jnp.mean((v - mu) ** 2, axis=-1, keepdims=True)
        return (v - mu) * jax.lax.rsqrt(var + 1e-5) * g_ref[0] + b_ref[0]

    # ------------------------- attention branch ------------------------------
    xn = layer_norm(x, g1, b1)                                   # (R, D) f32
    xnb = jnp.broadcast_to(xn.astype(cdt), (H, R, D))            # head-batched LN(x)

    def head_proj(w_ref, b_ref):                 # (H,R,D)@(H,D,hd) -> (H,R,hd), f32 acc
        return jnp.einsum("hrk,hkd->hrd", xnb, w_ref[0],
                          preferred_element_type=jnp.float32) + b_ref[0]

    qh = head_proj(wq, bq)                       # 1/sqrt(hd) pre-folded into wq/bq
    kh = head_proj(wk, bk)
    vh = head_proj(wv, bv)
    # (H, Bt*L, hd) -> (H*Bt, L, hd): pure leading-dim regrouping (best if L % 8 == 0)
    qh = qh.reshape(H * Bt, L, hd).astype(cdt)
    kh = kh.reshape(H * Bt, L, hd).astype(cdt)
    vh = vh.reshape(H * Bt, L, hd).astype(cdt)

    s = jnp.einsum("nqd,nkd->nqk", qh, kh,
                   preferred_element_type=jnp.float32)           # (H*Bt, L, L) f32
    s = s - jnp.max(s, axis=-1, keepdims=True)
    p = jnp.exp(s)
    p = p * pl.reciprocal(jnp.sum(p, axis=-1, keepdims=True), approx=True)  # EUP vrcp
    o = jnp.einsum("nqk,nkd->nqd", p.astype(cdt), vh,
                   preferred_element_type=jnp.float32)           # (H*Bt, L, hd)

    # Head merge folded into the out-projection: head-batched (R,hd)@(hd,D),
    # summed over heads (no concat / lane relayout).
    # TODO(synk): fuse the head-sum into a single (R, H*hd)x(H*hd, D) contraction
    # once a relayout-free head-major->packed repack is available.
    o = o.reshape(H, R, hd).astype(cdt)
    attn = jnp.einsum("hrd,hde->hre", o, wo[0],
                      preferred_element_type=jnp.float32)        # (H, R, D)
    x = x + jnp.sum(attn, axis=0) + bo[0]

    # ------------------------- MLP branch ------------------------------------
    xn2 = layer_norm(x, g2, b2)
    h1 = jnp.dot(xn2.astype(cdt), wfc[0],
                 preferred_element_type=jnp.float32) + bfc[0]    # (R, 4D) f32
    h1 = h1.astype(cdt)                          # QuickGELU in compute dtype (bf16 on
    h1 = h1 * jax.nn.sigmoid(1.702 * h1)         # v6e/v7x when weights are bf16)
    x = x + (jnp.dot(h1, wpr[0], preferred_element_type=jnp.float32) + bpr[0])

    x3 = x.reshape(Bt, L, D)
    acc_ref[...] = x3                            # carry to next layer (VMEM-resident)
    out_ref[...] = x3.astype(out_ref.dtype)


# ----------------------------------------------------------------------------
# VMEM budgeting + batch-tile selection
# ----------------------------------------------------------------------------
def _vmem_capacity():
    try:
        return int(pltpu.get_tpu_info().vmem_capacity_bytes)
    except Exception:
        return 64 << 20                          # conservative (v7x per-TC) fallback


def _layer_weight_bytes(D, cdt_bytes):
    return 12 * D * D * cdt_bytes + 13 * D * 4   # 12*D^2 weights + biases/LN (f32)


def _vmem_footprint(block_b, L, D, H, cdt_bytes, x_bytes):
    R = block_b * L
    hd = D // H
    f32 = 4
    pipeline = 2 * _layer_weight_bytes(D, cdt_bytes)      # double-buffered layer weights
    pipeline += 2 * 2 * block_b * L * D * x_bytes         # x-in and out blocks (2 bufs each)
    pipeline += block_b * L * D * f32                     # carry scratch
    temps = (4 * R * D * f32                              # x, xn, xn2, attn-sum
             + H * R * D * (cdt_bytes + f32)              # broadcast LN(x) + per-head outproj
             + 3 * H * R * hd * (f32 + cdt_bytes)         # q/k/v f32 + cdt copies
             + 2 * H * block_b * L * L * f32              # scores + probs
             + R * 4 * D * (f32 + cdt_bytes))             # h1 + gated h1
    return pipeline + int(1.25 * temps)                   # headroom for Mosaic scratch


def _pick_block_b(B, L, D, H, cdt_bytes, x_bytes, cap):
    small_vmem = cap < (100 << 20)               # v7x-like: 64 MiB/TC, 2 TensorCores
    target_rows = 256 if small_vmem else 512     # v5e/v6e (128 MiB) take bigger tiles
    budget = int(0.8 * cap)

    def ok(bb):
        if bb * L > max(target_rows, L):
            return False
        if small_vmem and B >= 2 and B // bb < 2:    # keep >=2 parallel steps for 2 TCs
            return False
        return _vmem_footprint(bb, L, D, H, cdt_bytes, x_bytes) <= budget

    cands = [d for d in range(1, B + 1) if B % d == 0 and ok(d)]
    if not cands:
        return 1
    aligned = [d for d in cands if (d * L) % 8 == 0]     # keep R a multiple of 8
    return max(aligned) if aligned else max(cands)


def _vmem_limit_bytes(block_b, L, D, H, cdt_bytes, x_bytes, cap):
    need = _vmem_footprint(block_b, L, D, H, cdt_bytes, x_bytes)
    return int(min(max(need, 32 << 20), int(0.9 * cap)))


# ----------------------------------------------------------------------------
# pallas_call wrapper for the fused layer stack
# ----------------------------------------------------------------------------
def _run_stack(x_bld, params, n_head):
    B, L, D = x_bld.shape
    NL = params[0].shape[0]
    cdt_bytes = jnp.dtype(params[2].dtype).itemsize
    x_bytes = jnp.dtype(x_bld.dtype).itemsize
    cap = _vmem_capacity()
    block_b = _pick_block_b(B, L, D, n_head, cdt_bytes, x_bytes, cap)
    nb = B // block_b

    x_spec = pl.BlockSpec((block_b, L, D), lambda b, l: (b, 0, 0))

    def layer_spec(arr):                          # per-layer weight block, indexed by layer
        nd = arr.ndim
        return pl.BlockSpec((1,) + arr.shape[1:],
                            lambda b, l, _nd=nd: (l,) + (0,) * (_nd - 1))

    # TODO(synk): for long sequences, tile K/V flash-style and add an L grid axis;
    # store MLP weights in int8 (v5e/v6e) / fp8 (v7x) with per-channel scales.
    return pl.pallas_call(
        partial(_stack_kernel, n_head=n_head),
        out_shape=jax.ShapeDtypeStruct((B, L, D), x_bld.dtype),
        grid=(nb, NL),
        in_specs=[x_spec] + [layer_spec(p) for p in params],
        out_specs=pl.BlockSpec((block_b, L, D), lambda b, l: (b, 0, 0)),
        scratch_shapes=[pltpu.VMEM((block_b, L, D), jnp.float32)],
        compiler_params=pltpu.CompilerParams(
            dimension_semantics=("parallel", "arbitrary"),
            vmem_limit_bytes=_vmem_limit_bytes(block_b, L, D, n_head,
                                               cdt_bytes, x_bytes, cap)),
    )(x_bld, *params)


# ----------------------------------------------------------------------------
# Parameter init (per-layer, PyTorch-equivalent pre-transposed layout)
# ----------------------------------------------------------------------------
def init_temporal_modelling(key, width, layers, param_dtype=jnp.float32):
    """Linear weights stored (in_features, out_features) = torch Linear.weight.T."""
    D = width
    out = []
    for _ in range(layers):
        key, *ks = jax.random.split(key, 13)
        kg1, kb1, kwi, kbi, kwo, kbo, kg2, kb2, kwf, kbf, kwp, kbp = ks
        out.append((
            (1.0 + 0.1 * jax.random.normal(kg1, (D,))).astype(jnp.float32),   # ln1 gamma
            (0.1 * jax.random.normal(kb1, (D,))).astype(jnp.float32),          # ln1 beta
            (0.02 * jax.random.normal(kwi, (D, 3 * D))).astype(param_dtype),   # in_proj W
            (0.02 * jax.random.normal(kbi, (3 * D,))).astype(jnp.float32),     # in_proj b
            (0.02 * jax.random.normal(kwo, (D, D))).astype(param_dtype),       # out_proj W
            (0.02 * jax.random.normal(kbo, (D,))).astype(jnp.float32),         # out_proj b
            (1.0 + 0.1 * jax.random.normal(kg2, (D,))).astype(jnp.float32),    # ln2 gamma
            (0.1 * jax.random.normal(kb2, (D,))).astype(jnp.float32),          # ln2 beta
            (0.02 * jax.random.normal(kwf, (D, 4 * D))).astype(param_dtype),   # c_fc W
            (0.02 * jax.random.normal(kbf, (4 * D,))).astype(jnp.float32),     # c_fc b
            (0.02 * jax.random.normal(kwp, (4 * D, D))).astype(param_dtype),   # c_proj W
            (0.02 * jax.random.normal(kbp, (D,))).astype(jnp.float32),         # c_proj b
        ))
    return out


def prepare_params(all_params, n_head):
    """Stack per-layer params on a leading layer axis, split heads on the attention
    weights, and fold the 1/sqrt(hd) query scale into wq/bq (host-side, one-off)."""
    NL = len(all_params)
    D = all_params[0][0].shape[-1]
    H = n_head
    hd = D // H
    scale = 1.0 / math.sqrt(hd)

    def stack(i):
        return jnp.stack([p[i] for p in all_params], axis=0)

    g1 = stack(0).reshape(NL, 1, D).astype(jnp.float32)
    b1 = stack(1).reshape(NL, 1, D).astype(jnp.float32)
    wqkv, bqkv = stack(2), stack(3)                                # (NL,D,3D), (NL,3D)
    wo = stack(4)                                                  # (NL,D,D)
    bo = stack(5).reshape(NL, 1, D).astype(jnp.float32)
    g2 = stack(6).reshape(NL, 1, D).astype(jnp.float32)
    b2 = stack(7).reshape(NL, 1, D).astype(jnp.float32)
    wfc = stack(8)
    bfc = stack(9).reshape(NL, 1, 4 * D).astype(jnp.float32)
    wpr = stack(10)
    bpr = stack(11).reshape(NL, 1, D).astype(jnp.float32)
    cdt = wqkv.dtype

    def split_w(w):                                 # (NL,D,D) -> (NL,H,D,hd)
        return jnp.transpose(w.reshape(NL, D, H, hd), (0, 2, 1, 3))

    def split_b(b):                                 # (NL,D) -> (NL,H,1,hd)
        return b.reshape(NL, H, 1, hd).astype(jnp.float32)

    wq = split_w((wqkv[:, :, 0:D].astype(jnp.float32) * scale).astype(cdt))
    wk = split_w(wqkv[:, :, D:2 * D])
    wv = split_w(wqkv[:, :, 2 * D:3 * D])
    bq = split_b(bqkv[:, 0:D].astype(jnp.float32) * scale)
    bk = split_b(bqkv[:, D:2 * D])
    bv = split_b(bqkv[:, 2 * D:3 * D])
    wo_h = wo.reshape(NL, H, hd, D)                 # rows of wo are head-major concat dim

    return (g1, b1, wq, bq, wk, bk, wv, bv, wo_h, bo,
            g2, b2, wfc, bfc, wpr, bpr)


def temporal_modelling(x_lnd, all_params, n_head):
    """x_lnd: (L, N, D) seq-first, like the PyTorch module. Best perf when L % 8 == 0
    and D (ideally hd) is a multiple of 128; other shapes are still correct."""
    L, N, D = x_lnd.shape
    assert D % n_head == 0, "width must be divisible by heads"
    stacked = prepare_params(all_params, n_head)
    x = jnp.transpose(x_lnd, (1, 0, 2))          # (B, L, D), once for the whole stack
    y = _run_stack(x, stacked, n_head)
    return jnp.transpose(y, (1, 0, 2))           # back to (L, N, D)


# ----------------------------------------------------------------------------
# Pure-JAX reference (uses the raw per-layer params) for correctness checks
# ----------------------------------------------------------------------------
def _ref_block(x, p, n_head):
    g1, b1, wqkv, bqkv, wo, bo, g2, b2, wfc, bfc, wpr, bpr = \
        [t.astype(jnp.float32) for t in p]
    L, B, D = x.shape
    hd = D // n_head

    def ln(v, g, b):
        mu = jnp.mean(v, -1, keepdims=True)
        var = jnp.mean((v - mu) ** 2, -1, keepdims=True)
        return (v - mu) / jnp.sqrt(var + 1e-5) * g + b

    xn = ln(x, g1, b1)
    qkv = xn @ wqkv + bqkv
    q, k, v = jnp.split(qkv, 3, axis=-1)
    rs = lambda t: t.reshape(L, B, n_head, hd).transpose(1, 2, 0, 3)
    qh, kh, vh = rs(q), rs(k), rs(v)
    s = jnp.einsum("bhqd,bhkd->bhqk", qh, kh) / math.sqrt(hd)
    pr = jax.nn.softmax(s, axis=-1)
    o = jnp.einsum("bhqk,bhkd->bhqd", pr, vh)
    o = o.transpose(2, 0, 1, 3).reshape(L, B, D)
    x = x + (o @ wo + bo)
    xn2 = ln(x, g2, b2)
    h = xn2 @ wfc + bfc
    h = h * jax.nn.sigmoid(1.702 * h)
    return x + (h @ wpr + bpr)


def _ref_forward(x, all_params, n_head):
    for p in all_params:
        x = _ref_block(x, p, n_head)
    return x


# ----------------------------------------------------------------------------
if __name__ == "__main__":
    # Small shapes consistent with the module: width=32, heads=4, layers=2,
    # seq_len=8, batch=2 (dropout=identity, attn_mask=None).
    width, heads, layers = 32, 4, 2
    L, B = 8, 2

    key = jax.random.PRNGKey(0)
    key, kx = jax.random.split(key)
    x = jax.random.normal(kx, (L, B, width), jnp.float32)   # (seq, batch, width)

    # --- f32 weights (tolerance loosened for the approx softmax reciprocal) ---
    params_f32 = init_temporal_modelling(key, width, layers, jnp.float32)
    out = jax.block_until_ready(temporal_modelling(x, params_f32, heads))
    ref = _ref_forward(x, params_f32, heads)
    assert out.shape == (L, B, width)
    err = float(jnp.max(jnp.abs(out - ref)))
    assert err < 1e-2, f"f32 max abs err {err}"

    # --- bf16 weights: MXU bf16 inputs + bf16 QuickGELU, f32 accumulation -----
    params_bf16 = init_temporal_modelling(key, width, layers, jnp.bfloat16)
    out_bf = jax.block_until_ready(temporal_modelling(x, params_bf16, heads))
    ref_bf = _ref_forward(x, params_bf16, heads)
    err_bf = float(jnp.max(jnp.abs(out_bf - ref_bf)))
    assert err_bf < 7e-2, f"bf16 max abs err {err_bf}"

    print("KERNEL_OK")
</pallas_src>

<mosaic_0001>
module attributes {stable_mosaic.version = 11 : i64} {
  func.func @_stack_kernel(%arg0: i32, %arg1: i32, %arg2: memref<1x8x32xf32, #tpu.memory_space<vmem>>, %arg3: memref<1x1x32xf32, #tpu.memory_space<vmem>>, %arg4: memref<1x1x32xf32, #tpu.memory_space<vmem>>, %arg5: memref<1x4x32x8xf32, #tpu.memory_space<vmem>>, %arg6: memref<1x4x1x8xf32, #tpu.memory_space<vmem>>, %arg7: memref<1x4x32x8xf32, #tpu.memory_space<vmem>>, %arg8: memref<1x4x1x8xf32, #tpu.memory_space<vmem>>, %arg9: memref<1x4x32x8xf32, #tpu.memory_space<vmem>>, %arg10: memref<1x4x1x8xf32, #tpu.memory_space<vmem>>, %arg11: memref<1x4x8x32xf32, #tpu.memory_space<vmem>>, %arg12: memref<1x1x32xf32, #tpu.memory_space<vmem>>, %arg13: memref<1x1x32xf32, #tpu.memory_space<vmem>>, %arg14: memref<1x1x32xf32, #tpu.memory_space<vmem>>, %arg15: memref<1x32x128xf32, #tpu.memory_space<vmem>>, %arg16: memref<1x1x128xf32, #tpu.memory_space<vmem>>, %arg17: memref<1x128x32xf32, #tpu.memory_space<vmem>>, %arg18: memref<1x1x32xf32, #tpu.memory_space<vmem>>, %arg19: memref<1x8x32xf32, #tpu.memory_space<vmem>>, %arg20: memref<1x8x32xf32, #tpu.memory_space<vmem>>) attributes {dimension_semantics = [#tpu.dimension_semantics<parallel>, #tpu.dimension_semantics<arbitrary>], iteration_bounds = array<i64: 2, 2>, scalar_prefetch = 0 : i64, scratch_operands = 1 : i64, tpu.core_type = #tpu.core_type<tc>, window_params = [{transform_indices = @transform_0, window_bounds = array<i64: 1, 8, 32>}, {transform_indices = @transform_1, window_bounds = array<i64: 1, 1, 32>}, {transform_indices = @transform_2, window_bounds = array<i64: 1, 1, 32>}, {transform_indices = @transform_3, window_bounds = array<i64: 1, 4, 32, 8>}, {transform_indices = @transform_4, window_bounds = array<i64: 1, 4, 1, 8>}, {transform_indices = @transform_5, window_bounds = array<i64: 1, 4, 32, 8>}, {transform_indices = @transform_6, window_bounds = array<i64: 1, 4, 1, 8>}, {transform_indices = @transform_7, window_bounds = array<i64: 1, 4, 32, 8>}, {transform_indices = @transform_8, window_bounds = array<i64: 1, 4, 1, 8>}, {transform_indices = @transform_9, window_bounds = array<i64: 1, 4, 8, 32>}, {transform_indices = @transform_10, window_bounds = array<i64: 1, 1, 32>}, {transform_indices = @transform_11, window_bounds = array<i64: 1, 1, 32>}, {transform_indices = @transform_12, window_bounds = array<i64: 1, 1, 32>}, {transform_indices = @transform_13, window_bounds = array<i64: 1, 32, 128>}, {transform_indices = @transform_14, window_bounds = array<i64: 1, 1, 128>}, {transform_indices = @transform_15, window_bounds = array<i64: 1, 128, 32>}, {transform_indices = @transform_16, window_bounds = array<i64: 1, 1, 32>}, {transform_indices = @transform_17, window_bounds = array<i64: 1, 8, 32>}]} {
    %c0_i32 = arith.constant 0 : i32
    %0 = arith.cmpi eq, %arg1, %c0_i32 : i32
    %1 = arith.extui %0 : i1 to i32
    %c0_i32_0 = arith.constant 0 : i32
    %2 = arith.cmpi ne, %1, %c0_i32_0 : i32
    scf.if %2 {
      %c0_86 = arith.constant 0 : index
      %c0_87 = arith.constant 0 : index
      %c0_88 = arith.constant 0 : index
      %127 = vector.load %arg2[%c0_86, %c0_87, %c0_88] : memref<1x8x32xf32, #tpu.memory_space<vmem>>, vector<1x8x32xf32>
      %c0_89 = arith.constant 0 : index
      %c0_90 = arith.constant 0 : index
      %c0_91 = arith.constant 0 : index
      %128 = vector.load %arg20[%c0_89, %c0_90, %c0_91] : memref<1x8x32xf32, #tpu.memory_space<vmem>>, vector<1x8x32xf32>
      tpu.vector_store %arg20[%c0_89, %c0_90, %c0_91], %127 {strides = array<i32>} : memref<1x8x32xf32, #tpu.memory_space<vmem>>, vector<1x8x32xf32>,
    } else {
    }
    %c0 = arith.constant 0 : index
    %c0_1 = arith.constant 0 : index
    %c0_2 = arith.constant 0 : index
    %3 = vector.load %arg20[%c0, %c0_1, %c0_2] : memref<1x8x32xf32, #tpu.memory_space<vmem>>, vector<1x8x32xf32>
    %4 = vector.shape_cast %3 : vector<1x8x32xf32> to vector<8x32xf32>
    %cst = arith.constant dense<0.000000e+00> : vector<8xf32>
    %5 = vector.multi_reduction <add>, %4, %cst [1] : vector<8x32xf32> to vector<8xf32>
    %6 = vector.shape_cast %5 : vector<8xf32> to vector<8x1xf32>
    %cst_3 = arith.constant 3.200000e+01 : f32
    %7 = vector.broadcast %cst_3 : f32 to vector<8x1xf32>
    %8 = arith.divf %6, %7 : vector<8x1xf32>
    %9 = vector.broadcast %8 : vector<8x1xf32> to vector<8x32xf32>
    %10 = arith.subf %4, %9 : vector<8x32xf32>
    %11 = arith.mulf %10, %10 : vector<8x32xf32>
    %cst_4 = arith.constant dense<0.000000e+00> : vector<8xf32>
    %12 = vector.multi_reduction <add>, %11, %cst_4 [1] : vector<8x32xf32> to vector<8xf32>
    %13 = vector.shape_cast %12 : vector<8xf32> to vector<8x1xf32>
    %cst_5 = arith.constant 3.200000e+01 : f32
    %14 = vector.broadcast %cst_5 : f32 to vector<8x1xf32>
    %15 = arith.divf %13, %14 : vector<8x1xf32>
    %16 = vector.broadcast %8 : vector<8x1xf32> to vector<8x32xf32>
    %17 = arith.subf %4, %16 : vector<8x32xf32>
    %cst_6 = arith.constant 9.99999974E-6 : f32
    %18 = vector.broadcast %cst_6 : f32 to vector<8x1xf32>
    %19 = arith.addf %15, %18 : vector<8x1xf32>
    %20 = math.rsqrt %19 : vector<8x1xf32>
    %21 = vector.broadcast %20 : vector<8x1xf32> to vector<8x32xf32>
    %22 = arith.mulf %17, %21 : vector<8x32xf32>
    %c0_7 = arith.constant 0 : index
    %c0_8 = arith.constant 0 : index
    %c0_9 = arith.constant 0 : index
    %23 = vector.load %arg3[%c0_7, %c0_8, %c0_9] : memref<1x1x32xf32, #tpu.memory_space<vmem>>, vector<1x1x32xf32>
    %24 = vector.shape_cast %23 : vector<1x1x32xf32> to vector<1x32xf32>
    %25 = vector.broadcast %24 : vector<1x32xf32> to vector<8x32xf32>
    %26 = arith.mulf %22, %25 : vector<8x32xf32>
    %c0_10 = arith.constant 0 : index
    %c0_11 = arith.constant 0 : index
    %c0_12 = arith.constant 0 : index
    %27 = vector.load %arg4[%c0_10, %c0_11, %c0_12] : memref<1x1x32xf32, #tpu.memory_space<vmem>>, vector<1x1x32xf32>
    %28 = vector.shape_cast %27 : vector<1x1x32xf32> to vector<1x32xf32>
    %29 = vector.broadcast %28 : vector<1x32xf32> to vector<8x32xf32>
    %30 = arith.addf %26, %29 : vector<8x32xf32>
    %31 = vector.shape_cast %30 : vector<8x32xf32> to vector<1x8x32xf32>
    %32 = vector.broadcast %31 : vector<1x8x32xf32> to vector<4x8x32xf32>
    %c0_13 = arith.constant 0 : index
    %c0_14 = arith.constant 0 : index
    %c0_15 = arith.constant 0 : index
    %c0_16 = arith.constant 0 : index
    %33 = vector.load %arg5[%c0_13, %c0_14, %c0_15, %c0_16] : memref<1x4x32x8xf32, #tpu.memory_space<vmem>>, vector<1x4x32x8xf32>
    %34 = vector.shape_cast %33 : vector<1x4x32x8xf32> to vector<4x32x8xf32>
    "tpu.trace_start"() <{level = 10 : i32, message = "hrk,hkd->hrd"}> : () -> ()
    %cst_17 = arith.constant dense<0.000000e+00> : vector<4x8x8xf32>
    %35 = tpu.matmul %32, %34, %cst_17 {dimension_numbers = #tpu.dot_dimension_numbers<[2], [1], [1], [2], [0, 0, 0, 1, 1, 2], [0], [0]>} : vector<4x8x32xf32>, vector<4x32x8xf32>, vector<4x8x8xf32> -> vector<4x8x8xf32>
    "tpu.trace_stop"() : () -> ()
    %c0_18 = arith.constant 0 : index
    %c0_19 = arith.constant 0 : index
    %c0_20 = arith.constant 0 : index
    %c0_21 = arith.constant 0 : index
    %36 = vector.load %arg6[%c0_18, %c0_19, %c0_20, %c0_21] : memref<1x4x1x8xf32, #tpu.memory_space<vmem>>, vector<1x4x1x8xf32>
    %37 = vector.shape_cast %36 : vector<1x4x1x8xf32> to vector<4x1x8xf32>
    %38 = vector.broadcast %37 : vector<4x1x8xf32> to vector<4x8x8xf32>
    %39 = arith.addf %35, %38 : vector<4x8x8xf32>
    %c0_22 = arith.constant 0 : index
    %c0_23 = arith.constant 0 : index
    %c0_24 = arith.constant 0 : index
    %c0_25 = arith.constant 0 : index
    %40 = vector.load %arg7[%c0_22, %c0_23, %c0_24, %c0_25] : memref<1x4x32x8xf32, #tpu.memory_space<vmem>>, vector<1x4x32x8xf32>
    %41 = vector.shape_cast %40 : vector<1x4x32x8xf32> to vector<4x32x8xf32>
    "tpu.trace_start"() <{level = 10 : i32, message = "hrk,hkd->hrd"}> : () -> ()
    %cst_26 = arith.constant dense<0.000000e+00> : vector<4x8x8xf32>
    %42 = tpu.matmul %32, %41, %cst_26 {dimension_numbers = #tpu.dot_dimension_numbers<[2], [1], [1], [2], [0, 0, 0, 1, 1, 2], [0], [0]>} : vector<4x8x32xf32>, vector<4x32x8xf32>, vector<4x8x8xf32> -> vector<4x8x8xf32>
    "tpu.trace_stop"() : () -> ()
    %c0_27 = arith.constant 0 : index
    %c0_28 = arith.constant 0 : index
    %c0_29 = arith.constant 0 : index
    %c0_30 = arith.constant 0 : index
    %43 = vector.load %arg8[%c0_27, %c0_28, %c0_29, %c0_30] : memref<1x4x1x8xf32, #tpu.memory_space<vmem>>, vector<1x4x1x8xf32>
    %44 = vector.shape_cast %43 : vector<1x4x1x8xf32> to vector<4x1x8xf32>
    %45 = vector.broadcast %44 : vector<4x1x8xf32> to vector<4x8x8xf32>
    %46 = arith.addf %42, %45 : vector<4x8x8xf32>
    %c0_31 = arith.constant 0 : index
    %c0_32 = arith.constant 0 : index
    %c0_33 = arith.constant 0 : index
    %c0_34 = arith.constant 0 : index
    %47 = vector.load %arg9[%c0_31, %c0_32, %c0_33, %c0_34] : memref<1x4x32x8xf32, #tpu.memory_space<vmem>>, vector<1x4x32x8xf32>
    %48 = vector.shape_cast %47 : vector<1x4x32x8xf32> to vector<4x32x8xf32>
    "tpu.trace_start"() <{level = 10 : i32, message = "hrk,hkd->hrd"}> : () -> ()
    %cst_35 = arith.constant dense<0.000000e+00> : vector<4x8x8xf32>
    %49 = tpu.matmul %32, %48, %cst_35 {dimension_numbers = #tpu.dot_dimension_numbers<[2], [1], [1], [2], [0, 0, 0, 1, 1, 2], [0], [0]>} : vector<4x8x32xf32>, vector<4x32x8xf32>, vector<4x8x8xf32> -> vector<4x8x8xf32>
    "tpu.trace_stop"() : () -> ()
    %c0_36 = arith.constant 0 : index
    %c0_37 = arith.constant 0 : index
    %c0_38 = arith.constant 0 : index
    %c0_39 = arith.constant 0 : index
    %50 = vector.load %arg10[%c0_36, %c0_37, %c0_38, %c0_39] : memref<1x4x1x8xf32, #tpu.memory_space<vmem>>, vector<1x4x1x8xf32>
    %51 = vector.shape_cast %50 : vector<1x4x1x8xf32> to vector<4x1x8xf32>
    %52 = vector.broadcast %51 : vector<4x1x8xf32> to vector<4x8x8xf32>
    %53 = arith.addf %49, %52 : vector<4x8x8xf32>
    "tpu.trace_start"() <{level = 10 : i32, message = "nqd,nkd->nqk"}> : () -> ()
    %cst_40 = arith.constant dense<0.000000e+00> : vector<4x8x8xf32>
    %54 = tpu.matmul %39, %46, %cst_40 {dimension_numbers = #tpu.dot_dimension_numbers<[2], [2], [1], [1], [0, 0, 0, 1, 1, 1], [0], [0]>} : vector<4x8x8xf32>, vector<4x8x8xf32>, vector<4x8x8xf32> -> vector<4x8x8xf32>
    "tpu.trace_stop"() : () -> ()
    %cst_41 = arith.constant dense<0xFF800000> : vector<4x8xf32>
    %55 = vector.multi_reduction <maximumf>, %54, %cst_41 [2] : vector<4x8x8xf32> to vector<4x8xf32>
    %56 = vector.shape_cast %55 : vector<4x8xf32> to vector<4x8x1xf32>
    %57 = vector.broadcast %56 : vector<4x8x1xf32> to vector<4x8x8xf32>
    %58 = arith.subf %54, %57 : vector<4x8x8xf32>
    %59 = math.exp %58 : vector<4x8x8xf32>
    %cst_42 = arith.constant dense<0.000000e+00> : vector<4x8xf32>
    %60 = vector.multi_reduction <add>, %59, %cst_42 [2] : vector<4x8x8xf32> to vector<4x8xf32>
    %61 = vector.shape_cast %60 : vector<4x8xf32> to vector<4x8x1xf32>
    %62 = tpu.reciprocal %61 {approx = true} : vector<4x8x1xf32> -> vector<4x8x1xf32>
    %63 = vector.broadcast %62 : vector<4x8x1xf32> to vector<4x8x8xf32>
    %64 = arith.mulf %59, %63 : vector<4x8x8xf32>
    "tpu.trace_start"() <{level = 10 : i32, message = "nqk,nkd->nqd"}> : () -> ()
    %cst_43 = arith.constant dense<0.000000e+00> : vector<4x8x8xf32>
    %65 = tpu.matmul %64, %53, %cst_43 {dimension_numbers = #tpu.dot_dimension_numbers<[2], [1], [1], [2], [0, 0, 0, 1, 1, 2], [0], [0]>} : vector<4x8x8xf32>, vector<4x8x8xf32>, vector<4x8x8xf32> -> vector<4x8x8xf32>
    "tpu.trace_stop"() : () -> ()
    %c0_44 = arith.constant 0 : index
    %c0_45 = arith.constant 0 : index
    %c0_46 = arith.constant 0 : index
    %c0_47 = arith.constant 0 : index
    %66 = vector.load %arg11[%c0_44, %c0_45, %c0_46, %c0_47] : memref<1x4x8x32xf32, #tpu.memory_space<vmem>>, vector<1x4x8x32xf32>
    %67 = vector.shape_cast %66 : vector<1x4x8x32xf32> to vector<4x8x32xf32>
    "tpu.trace_start"() <{level = 10 : i32, message = "hrd,hde->hre"}> : () -> ()
    %cst_48 = arith.constant dense<0.000000e+00> : vector<4x8x32xf32>
    %68 = tpu.matmul %65, %67, %cst_48 {dimension_numbers = #tpu.dot_dimension_numbers<[2], [1], [1], [2], [0, 0, 0, 1, 1, 2], [0], [0]>} : vector<4x8x8xf32>, vector<4x8x32xf32>, vector<4x8x32xf32> -> vector<4x8x32xf32>
    "tpu.trace_stop"() : () -> ()
    %cst_49 = arith.constant dense<0.000000e+00> : vector<8x32xf32>
    %69 = vector.multi_reduction <add>, %68, %cst_49 [0] : vector<4x8x32xf32> to vector<8x32xf32>
    %70 = arith.addf %4, %69 : vector<8x32xf32>
    %c0_50 = arith.constant 0 : index
    %c0_51 = arith.constant 0 : index
    %c0_52 = arith.constant 0 : index
    %71 = vector.load %arg12[%c0_50, %c0_51, %c0_52] : memref<1x1x32xf32, #tpu.memory_space<vmem>>, vector<1x1x32xf32>
    %72 = vector.shape_cast %71 : vector<1x1x32xf32> to vector<1x32xf32>
    %73 = vector.broadcast %72 : vector<1x32xf32> to vector<8x32xf32>
    %74 = arith.addf %70, %73 : vector<8x32xf32>
    %cst_53 = arith.constant dense<0.000000e+00> : vector<8xf32>
    %75 = vector.multi_reduction <add>, %74, %cst_53 [1] : vector<8x32xf32> to vector<8xf32>
    %76 = vector.shape_cast %75 : vector<8xf32> to vector<8x1xf32>
    %cst_54 = arith.constant 3.200000e+01 : f32
    %77 = vector.broadcast %cst_54 : f32 to vector<8x1xf32>
    %78 = arith.divf %76, %77 : vector<8x1xf32>
    %79 = vector.broadcast %78 : vector<8x1xf32> to vector<8x32xf32>
    %80 = arith.subf %74, %79 : vector<8x32xf32>
    %81 = arith.mulf %80, %80 : vector<8x32xf32>
    %cst_55 = arith.constant dense<0.000000e+00> : vector<8xf32>
    %82 = vector.multi_reduction <add>, %81, %cst_55 [1] : vector<8x32xf32> to vector<8xf32>
    %83 = vector.shape_cast %82 : vector<8xf32> to vector<8x1xf32>
    %cst_56 = arith.constant 3.200000e+01 : f32
    %84 = vector.broadcast %cst_56 : f32 to vector<8x1xf32>
    %85 = arith.divf %83, %84 : vector<8x1xf32>
    %86 = vector.broadcast %78 : vector<8x1xf32> to vector<8x32xf32>
    %87 = arith.subf %74, %86 : vector<8x32xf32>
    %cst_57 = arith.constant 9.99999974E-6 : f32
    %88 = vector.broadcast %cst_57 : f32 to vector<8x1xf32>
    %89 = arith.addf %85, %88 : vector<8x1xf32>
    %90 = math.rsqrt %89 : vector<8x1xf32>
    %91 = vector.broadcast %90 : vector<8x1xf32> to vector<8x32xf32>
    %92 = arith.mulf %87, %91 : vector<8x32xf32>
    %c0_58 = arith.constant 0 : index
    %c0_59 = arith.constant 0 : index
    %c0_60 = arith.constant 0 : index
    %93 = vector.load %arg13[%c0_58, %c0_59, %c0_60] : memref<1x1x32xf32, #tpu.memory_space<vmem>>, vector<1x1x32xf32>
    %94 = vector.shape_cast %93 : vector<1x1x32xf32> to vector<1x32xf32>
    %95 = vector.broadcast %94 : vector<1x32xf32> to vector<8x32xf32>
    %96 = arith.mulf %92, %95 : vector<8x32xf32>
    %c0_61 = arith.constant 0 : index
    %c0_62 = arith.constant 0 : index
    %c0_63 = arith.constant 0 : index
    %97 = vector.load %arg14[%c0_61, %c0_62, %c0_63] : memref<1x1x32xf32, #tpu.memory_space<vmem>>, vector<1x1x32xf32>
    %98 = vector.shape_cast %97 : vector<1x1x32xf32> to vector<1x32xf32>
    %99 = vector.broadcast %98 : vector<1x32xf32> to vector<8x32xf32>
    %100 = arith.addf %96, %99 : vector<8x32xf32>
    %c0_64 = arith.constant 0 : index
    %c0_65 = arith.constant 0 : index
    %c0_66 = arith.constant 0 : index
    %101 = vector.load %arg15[%c0_64, %c0_65, %c0_66] : memref<1x32x128xf32, #tpu.memory_space<vmem>>, vector<1x32x128xf32>
    %102 = vector.shape_cast %101 : vector<1x32x128xf32> to vector<32x128xf32>
    %cst_67 = arith.constant dense<0.000000e+00> : vector<8x128xf32>
    %103 = tpu.matmul %100, %102, %cst_67 {dimension_numbers = #tpu.dot_dimension_numbers<[1], [0], [0], [1], [0, 0, 1, 1], [], []>} : vector<8x32xf32>, vector<32x128xf32>, vector<8x128xf32> -> vector<8x128xf32>
    %c0_68 = arith.constant 0 : index
    %c0_69 = arith.constant 0 : index
    %c0_70 = arith.constant 0 : index
    %104 = vector.load %arg16[%c0_68, %c0_69, %c0_70] : memref<1x1x128xf32, #tpu.memory_space<vmem>>, vector<1x1x128xf32>
    %105 = vector.shape_cast %104 : vector<1x1x128xf32> to vector<1x128xf32>
    %106 = vector.broadcast %105 : vector<1x128xf32> to vector<8x128xf32>
    %107 = arith.addf %103, %106 : vector<8x128xf32>
    %cst_71 = arith.constant 1.702000e+00 : f32
    %108 = vector.broadcast %cst_71 : f32 to vector<8x128xf32>
    %109 = arith.mulf %108, %107 : vector<8x128xf32>
    %110 = arith.negf %109 : vector<8x128xf32>
    %111 = math.exp %110 : vector<8x128xf32>
    %cst_72 = arith.constant 1.000000e+00 : f32
    %112 = vector.broadcast %cst_72 : f32 to vector<8x128xf32>
    %113 = arith.addf %112, %111 : vector<8x128xf32>
    %114 = arith.divf %112, %113 : vector<8x128xf32>
    %115 = arith.mulf %107, %114 : vector<8x128xf32>
    %c0_73 = arith.constant 0 : index
    %c0_74 = arith.constant 0 : index
    %c0_75 = arith.constant 0 : index
    %116 = vector.load %arg17[%c0_73, %c0_74, %c0_75] : memref<1x128x32xf32, #tpu.memory_space<vmem>>, vector<1x128x32xf32>
    %117 = vector.shape_cast %116 : vector<1x128x32xf32> to vector<128x32xf32>
    %cst_76 = arith.constant dense<0.000000e+00> : vector<8x32xf32>
    %118 = tpu.matmul %115, %117, %cst_76 {dimension_numbers = #tpu.dot_dimension_numbers<[1], [0], [0], [1], [0, 0, 1, 1], [], []>} : vector<8x128xf32>, vector<128x32xf32>, vector<8x32xf32> -> vector<8x32xf32>
    %c0_77 = arith.constant 0 : index
    %c0_78 = arith.constant 0 : index
    %c0_79 = arith.constant 0 : index
    %119 = vector.load %arg18[%c0_77, %c0_78, %c0_79] : memref<1x1x32xf32, #tpu.memory_space<vmem>>, vector<1x1x32xf32>
    %120 = vector.shape_cast %119 : vector<1x1x32xf32> to vector<1x32xf32>
    %121 = vector.broadcast %120 : vector<1x32xf32> to vector<8x32xf32>
    %122 = arith.addf %118, %121 : vector<8x32xf32>
    %123 = arith.addf %74, %122 : vector<8x32xf32>
    %124 = vector.shape_cast %123 : vector<8x32xf32> to vector<1x8x32xf32>
    %c0_80 = arith.constant 0 : index
    %c0_81 = arith.constant 0 : index
    %c0_82 = arith.constant 0 : index
    %125 = vector.load %arg20[%c0_80, %c0_81, %c0_82] : memref<1x8x32xf32, #tpu.memory_space<vmem>>, vector<1x8x32xf32>
    tpu.vector_store %arg20[%c0_80, %c0_81, %c0_82], %124 {strides = array<i32>} : memref<1x8x32xf32, #tpu.memory_space<vmem>>, vector<1x8x32xf32>,
    %c0_83 = arith.constant 0 : index
    %c0_84 = arith.constant 0 : index
    %c0_85 = arith.constant 0 : index
    %126 = vector.load %arg19[%c0_83, %c0_84, %c0_85] : memref<1x8x32xf32, #tpu.memory_space<vmem>>, vector<1x8x32xf32>
    tpu.vector_store %arg19[%c0_83, %c0_84, %c0_85], %124 {strides = array<i32>} : memref<1x8x32xf32, #tpu.memory_space<vmem>>, vector<1x8x32xf32>,
    return
  }
  func.func @transform_0(%arg0: i32, %arg1: i32) -> (i32, i32, i32) {
    %c0_i32 = arith.constant 0 : i32
    %c0_i32_0 = arith.constant 0 : i32
    %c0_i32_1 = arith.constant 0 : i32
    return %arg0, %c0_i32, %c0_i32_0 : i32, i32, i32
  }
  func.func @transform_1(%arg0: i32, %arg1: i32) -> (i32, i32, i32) {
    %c0_i32 = arith.constant 0 : i32
    %c0_i32_0 = arith.constant 0 : i32
    %c0_i32_1 = arith.constant 0 : i32
    return %arg1, %c0_i32, %c0_i32_0 : i32, i32, i32
  }
  func.func @transform_2(%arg0: i32, %arg1: i32) -> (i32, i32, i32) {
    %c0_i32 = arith.constant 0 : i32
    %c0_i32_0 = arith.constant 0 : i32
    %c0_i32_1 = arith.constant 0 : i32
    return %arg1, %c0_i32, %c0_i32_0 : i32, i32, i32
  }
  func.func @transform_3(%arg0: i32, %arg1: i32) -> (i32, i32, i32, i32) {
    %c0_i32 = arith.constant 0 : i32
    %c0_i32_0 = arith.constant 0 : i32
    %c0_i32_1 = arith.constant 0 : i32
    %c0_i32_2 = arith.constant 0 : i32
    return %arg1, %c0_i32, %c0_i32_0, %c0_i32_1 : i32, i32, i32, i32
  }
  func.func @transform_4(%arg0: i32, %arg1: i32) -> (i32, i32, i32, i32) {
    %c0_i32 = arith.constant 0 : i32
    %c0_i32_0 = arith.constant 0 : i32
    %c0_i32_1 = arith.constant 0 : i32
    %c0_i32_2 = arith.constant 0 : i32
    return %arg1, %c0_i32, %c0_i32_0, %c0_i32_1 : i32, i32, i32, i32
  }
  func.func @transform_5(%arg0: i32, %arg1: i32) -> (i32, i32, i32, i32) {
    %c0_i32 = arith.constant 0 : i32
    %c0_i32_0 = arith.constant 0 : i32
    %c0_i32_1 = arith.constant 0 : i32
    %c0_i32_2 = arith.constant 0 : i32
    return %arg1, %c0_i32, %c0_i32_0, %c0_i32_1 : i32, i32, i32, i32
  }
  func.func @transform_6(%arg0: i32, %arg1: i32) -> (i32, i32, i32, i32) {
    %c0_i32 = arith.constant 0 : i32
    %c0_i32_0 = arith.constant 0 : i32
    %c0_i32_1 = arith.constant 0 : i32
    %c0_i32_2 = arith.constant 0 : i32
    return %arg1, %c0_i32, %c0_i32_0, %c0_i32_1 : i32, i32, i32, i32
  }
  func.func @transform_7(%arg0: i32, %arg1: i32) -> (i32, i32, i32, i32) {
    %c0_i32 = arith.constant 0 : i32
    %c0_i32_0 = arith.constant 0 : i32
    %c0_i32_1 = arith.constant 0 : i32
    %c0_i32_2 = arith.constant 0 : i32
    return %arg1, %c0_i32, %c0_i32_0, %c0_i32_1 : i32, i32, i32, i32
  }
  func.func @transform_8(%arg0: i32, %arg1: i32) -> (i32, i32, i32, i32) {
    %c0_i32 = arith.constant 0 : i32
    %c0_i32_0 = arith.constant 0 : i32
    %c0_i32_1 = arith.constant 0 : i32
    %c0_i32_2 = arith.constant 0 : i32
    return %arg1, %c0_i32, %c0_i32_0, %c0_i32_1 : i32, i32, i32, i32
  }
  func.func @transform_9(%arg0: i32, %arg1: i32) -> (i32, i32, i32, i32) {
    %c0_i32 = arith.constant 0 : i32
    %c0_i32_0 = arith.constant 0 : i32
    %c0_i32_1 = arith.constant 0 : i32
    %c0_i32_2 = arith.constant 0 : i32
    return %arg1, %c0_i32, %c0_i32_0, %c0_i32_1 : i32, i32, i32, i32
  }
  func.func @transform_10(%arg0: i32, %arg1: i32) -> (i32, i32, i32) {
    %c0_i32 = arith.constant 0 : i32
    %c0_i32_0 = arith.constant 0 : i32
    %c0_i32_1 = arith.constant 0 : i32
    return %arg1, %c0_i32, %c0_i32_0 : i32, i32, i32
  }
  func.func @transform_11(%arg0: i32, %arg1: i32) -> (i32, i32, i32) {
    %c0_i32 = arith.constant 0 : i32
    %c0_i32_0 = arith.constant 0 : i32
    %c0_i32_1 = arith.constant 0 : i32
    return %arg1, %c0_i32, %c0_i32_0 : i32, i32, i32
  }
  func.func @transform_12(%arg0: i32, %arg1: i32) -> (i32, i32, i32) {
    %c0_i32 = arith.constant 0 : i32
    %c0_i32_0 = arith.constant 0 : i32
    %c0_i32_1 = arith.constant 0 : i32
    return %arg1, %c0_i32, %c0_i32_0 : i32, i32, i32
  }
  func.func @transform_13(%arg0: i32, %arg1: i32) -> (i32, i32, i32) {
    %c0_i32 = arith.constant 0 : i32
    %c0_i32_0 = arith.constant 0 : i32
    %c0_i32_1 = arith.constant 0 : i32
    return %arg1, %c0_i32, %c0_i32_0 : i32, i32, i32
  }
  func.func @transform_14(%arg0: i32, %arg1: i32) -> (i32, i32, i32) {
    %c0_i32 = arith.constant 0 : i32
    %c0_i32_0 = arith.constant 0 : i32
    %c0_i32_1 = arith.constant 0 : i32
    return %arg1, %c0_i32, %c0_i32_0 : i32, i32, i32
  }
  func.func @transform_15(%arg0: i32, %arg1: i32) -> (i32, i32, i32) {
    %c0_i32 = arith.constant 0 : i32
    %c0_i32_0 = arith.constant 0 : i32
    %c0_i32_1 = arith.constant 0 : i32
    return %arg1, %c0_i32, %c0_i32_0 : i32, i32, i32
  }
  func.func @transform_16(%arg0: i32, %arg1: i32) -> (i32, i32, i32) {
    %c0_i32 = arith.constant 0 : i32
    %c0_i32_0 = arith.constant 0 : i32
    %c0_i32_1 = arith.constant 0 : i32
    return %arg1, %c0_i32, %c0_i32_0 : i32, i32, i32
  }
  func.func @transform_17(%arg0: i32, %arg1: i32) -> (i32, i32, i32) {
    %c0_i32 = arith.constant 0 : i32
    %c0_i32_0 = arith.constant 0 : i32
    %c0_i32_1 = arith.constant 0 : i32
    return %arg0, %c0_i32, %c0_i32_0 : i32, i32, i32
  }
}

</mosaic_0001>

<bundles_post_ra>
// kernel: tpu_custom_call.1
= control target key start
LH: loop header
LB: loop body
LE: loop exit
PB: predicated region body
PF: predicated region fallthrough
CT: control target
= control target key end

     0   :  { %s4516_s0 = inlined_call_operand.vmem [shape: f32[2,8,32], index: 0, kind: input, shape index: {}]   ;;  %s4517_s1 = inlined_call_operand.vmem [shape: f32[2,1,32], index: 1, kind: input, shape index: {}]   ;;  %s4518_s2 = inlined_call_operand.vmem [shape: f32[2,1,32], index: 2, kind: input, shape index: {}]   ;;  %s4519_s3 = inlined_call_operand.vmem [shape: f32[2,4,32,8], index: 3, kind: input, shape index: {}]   ;;  %s4520_s4 = inlined_call_operand.vmem [shape: f32[2,4,1,8], index: 4, kind: input, shape index: {}]   ;;  %s4521_s5 = inlined_call_operand.vmem [shape: f32[2,4,32,8], index: 5, kind: input, shape index: {}]   ;;  %s4522_s6 = inlined_call_operand.vmem [shape: f32[2,4,1,8], index: 6, kind: input, shape index: {}]   ;;  %s4523_s7 = inlined_call_operand.vmem [shape: f32[2,4,32,8], index: 7, kind: input, shape index: {}]   ;;  %s4524_s8 = inlined_call_operand.vmem [shape: f32[2,4,1,8], index: 8, kind: input, shape index: {}]   ;;  %s4525_s9 = inlined_call_operand.vmem [shape: f32[2,4,8,32], index: 9, kind: input, shape index: {}]   ;;  %s4526_s10 = inlined_call_operand.vmem [shape: f32[2,1,32], index: 10, kind: input, shape index: {}]   ;;  %s4527_s11 = inlined_call_operand.vmem [shape: f32[2,1,32], index: 11, kind: input, shape index: {}]   ;;  %s4528_s12 = inlined_call_operand.vmem [shape: f32[2,1,32], index: 12, kind: input, shape index: {}]   ;;  %s4529_s13 = inlined_call_operand.vmem [shape: f32[2,32,128], index: 13, kind: input, shape index: {}]   ;;  %s4530_s14 = inlined_call_operand.vmem [shape: f32[2,1,128], index: 14, kind: input, shape index: {}]   ;;  %s4531_s15 = inlined_call_operand.vmem [shape: f32[2,128,32], index: 15, kind: input, shape index: {}]   ;;  %s4532_s16 = inlined_call_operand.vmem [shape: f32[2,1,32], index: 16, kind: input, shape index: {}]   ;;  %s4533_s17 = inlined_call_operand.hbm [shape: f32[2,8,32], index: 17, kind: output, shape index: {}]  }
   0x1   :  { %4551 = sst [smem:[#allocation21_spill]] %s4516_s0 }
   0x2   :  { %4552 = sst [smem:[#allocation22_spill]] %s4517_s1 }
   0x3   :  { %4553 = sst [smem:[#allocation23_spill]] %s4518_s2 }
   0x4   :  { %4554 = sst [smem:[#allocation24_spill]] %s4519_s3 }
   0x5   :  { %4555 = sst [smem:[#allocation25_spill]] %s4520_s4 }
   0x6   :  { %4556 = sst [smem:[#allocation26_spill]] %s4521_s5 }
   0x7   :  { %4557 = sst [smem:[#allocation27_spill]] %s4522_s6 }
   0x8   :  { %4558 = sst [smem:[#allocation28_spill]] %s4523_s7 }
   0x9   :  { %4559 = sst [smem:[#allocation29_spill]] %s4524_s8 }
   0xa   :  { %4560 = sst [smem:[#allocation30_spill]] %s4525_s9 }
   0xb   :  { %4561 = sst [smem:[#allocation31_spill]] %s4527_s11 }
   0xc   :  { %4562 = sst [smem:[#allocation32_spill]] %s4531_s15 }
   0xd   :  { %4563 = sst [smem:[#allocation33_spill]] %s4532_s16 }
   0xe   :  { %4564 = sst [smem:[#allocation34_spill]] %s4533_s17 }
   0xf   :  { %22 = vsyncpa [#allocation4], 0 }
  0x10   :  { %24 = vsyncpa [#allocation4 + $0x1], 0  ;;  %s3974_s24 = smov 0   ;;  %s3976_s25 = smov 0  }
  0x11   :  { %s3978_s26 = smov 0   ;;  %s3980_s27 = smov 0  }
  0x12   :  { %s3982_s28 = smov 0   ;;  %s3984_s29 = smov 0  }
  0x13   :  { %s3986_s0 = smov 0   ;;  %s3988_s30 = smov 0  }
  0x14 LB: > { %4565 = sst [smem:[#allocation6_spill]] %s3851_s24  ;;  %s3264_s18 = sadd.s32 4294967295, %s3879_s30   ;;  %s3879_s30 = sphi %s3988_s30, %s30_s30   ;;  %s3875_s0 = sphi %s3986_s0, %s4620_s0   ;;  %s3871_s29 = sphi %s3984_s29, %s4619_s29   ;;  %s3867_s28 = sphi %s3982_s28, %s4618_s28   ;;  %s3863_s27 = sphi %s3980_s27, %s4617_s27   ;;  %s3859_s26 = sphi %s3978_s26, %s4616_s26   ;;  %s3855_s25 = sphi %s3976_s25, %s4615_s25   ;;  %s3851_s24 = sphi %s3974_s24, %s4614_s24  }
  0x15   : > { %4566 = sst [smem:[#allocation7_spill]] %s3855_s25  ;;  %s3265_s19 = sadd.s32 4294967294, %s3879_s30  }
  0x16   : > { %4567 = sst [smem:[#allocation8_spill]] %s3859_s26  ;;  %s39_s1 = sadd.s32 1, %s3871_s29 }
  0x17   : > { %4568 = sst [smem:[#allocation9_spill]] %s3863_s27  ;;  %p40_p0 = scmp.ge.s32.totalorder %s39_s1, 2 }
  0x18   : > { %4569 = sst [smem:[#allocation10_spill]] %s3867_s28  ;;  %s42_s20 = sadd.s32 1, %s3875_s0 }
  0x19   : > { %4570 = sst [smem:[#allocation11_spill]] %s3871_s29  ;;  %p501_p1 = scmp.ne.s32.totalorder %s3859_s26, %s3855_s25 }
  0x1a   : > { %4571 = sst [smem:[#allocation12_spill]] %s3875_s0  ;;  %p502_p2 = scmp.eq.s32.totalorder %s3264_s18, 3 }
  0x1b   : > { %4572 = sst [smem:[#allocation13_spill]] %s3879_s30  ;;  %s4622_s1 = smov (%p40_p0, %s39_s1), 0 }
  0x1c   : > { %4573 = sst [smem:[#allocation14_spill]] %s4622_s1  ;;  %s4624_s20 = smov (!%p40_p0, %s42_s20), %s3875_s0 }
  0x1d   : > { %p4023_p3 = por %p502_p2, %p501_p1  ;;  %p507_p4 = scmp.ne.s32.totalorder %s3855_s25, %s3851_s24 }
  0x1e   : > { %p44_p5 = scmp.ge.s32.totalorder %s4624_s20, 2  ;;  %p508_p6 = scmp.eq.s32.totalorder %s3265_s19, 3 }
  0x1f   : > { %s4574_s21 = scalar_select %p4023_p3, 1, 0 }
  0x20   : > { %p3268_p7 = scmp.ge.s32.totalorder %s3879_s30, 1  ;;  %p644_p8 = scmp.lt.s32.totalorder %s3879_s30, 5 }
  0x21   : > { %4575 = sst [smem:[#allocation15_spill]] %s4574_s21  ;;  %s4626_s20 = smov (%p44_p5, %s4624_s20), 0 }
  0x22   : > { %4576 = sst [smem:[#allocation16_spill]] %s4626_s20  ;;  %p4033_p9 = por %p508_p6, %p507_p4 }
  0x23   : > { %p645_p10 = pnand %p3268_p7, %p644_p8  ;;  %s488_s23 = ssub.s32 %s3875_s0, %s4626_s20 }
  0x24   : > { %s4577_s22 = scalar_select %p4033_p9, 1, 0 }
  0x25   : > { %s491_s18 = sadd.s32 1, %s3859_s26  ;;  %p489_p11 = scmp.eq.s32.totalorder %s488_s23, 0 }
  0x26   : > { %4578 = sst [smem:[#allocation17_spill]] %s4577_s22  ;;  %648 = sbr.rel (%p645_p10) target bundleno = 2276 (0x8e4), region = 88 }
  0x27   : > { %s4041_s1 = scalar_select %p489_p11, %s3859_s26, %s491_s18  }
  0x29   : > { %4579 = sst [smem:[#allocation18_spill]] %s4041_s1 }
  0x2b   : > { %s4540_s19 = sand.u32 1, %s3855_s25   ;;  %p758_p12 = scmp.lt.s32.totalorder %s3867_s28, 1 }
  0x2c   : > { %s4047_s29 = sshll.u32 %s4540_s19, 3  ;;  %p762_p13 = scmp.lt.s32.totalorder %s3863_s27, 1 }
  0x2d   : > { %s759_s22 = scalar_select %p758_p12, %s3867_s28, 1 }
  0x2e   : > { %s4052_s24 = scalar_select %p762_p13, %s3863_s27, 1 }
  0x2f   : > { %s3270_s23 = sshll.u32 %s759_s22, 3  ;;  %s4580_s0 = sld [smem:[#allocation21_spill]] }
  0x30   : > { %s3340_s27 = sshll.u32 %s4052_s24, 7  ;;  %s4583_s3 = sld [smem:[#allocation24_spill]] }
  0x31   : > { %s3273_s20 = sshll.u32 %s4052_s24, 2  ;;  %s4584_s4 = sld [smem:[#allocation25_spill]] }
  0x32   : > { %s4586_s5 = sld [smem:[#allocation26_spill]]  ;;  %s808_s2 = scalar_lea.vmem %s4528_s12, %s4052_s24 }
  0x33   : > { %s4587_s6 = sld [smem:[#allocation27_spill]] }
  0x34   : > { %s4588_s7 = sld [smem:[#allocation28_spill]] }
  0x35   : > { %s761_s1 = scalar_lea.vmem %s4580_s0, %s3270_s23  ;;  %s4589_s8 = sld [smem:[#allocation29_spill]] }
  0x36   : > { %s4069_s22 = scalar_lea.vmem %s4583_s3, %s3340_s27  ;;  %s3343_s0 = sshll.u32 %s4052_s24, 5 }
  0x37   : > { %s4075_s23 = scalar_lea.vmem %s4584_s4, %s3273_s20  ;;  %s4590_s9 = sld [smem:[#allocation30_spill]] }
  0x38   : > { %4585 = sst [smem:[#allocation19_spill]] %s4075_s23  ;;  %s4080_s25 = scalar_lea.vmem %s4586_s5, %s3340_s27 }
  0x39   : > { %s4085_s28 = scalar_lea.vmem %s4587_s6, %s3273_s20  ;;  %s4593_s21 = sld [smem:[#allocation32_spill]] }
  0x3a   : > { %s4090_s17 = scalar_lea.vmem %s4588_s7, %s3340_s27  ;;  %s4594_s15 = sld [smem:[#allocation33_spill]] }
  0x3b   : > { %s4095_s18 = scalar_lea.vmem %s4589_s8, %s3273_s20  ;;  %s4118_s8 = scalar_lea.vmem %s4529_s13, %s3343_s0 }
  0x3c   : > { %s757_s7 = scalar_lea.vmem [#allocation3], %s4047_s29  ;;  %s4595_s16 = sld [smem:[#allocation9_spill]] }
  0x3d   : > { %s4101_s30 = scalar_lea.vmem %s4590_s9, %s3343_s0  ;;  %s816_s9 = scalar_lea.vmem %s4530_s14, %s4052_s24 }
  0x3e   : > { %4591 = sst [smem:[#allocation20_spill]] %s4101_s30 }
  0x3f   : > { %s4127_s19 = scalar_lea.vmem %s4593_s21, %s3340_s27 }
  0x40   : > { %s824_s11 = scalar_lea.vmem %s4594_s15, %s4052_s24 }
  0x42   : > { %p3286_p0 = scmp.ne.s32.totalorder %s4595_s16, 0 }
  0x44   : > { %828 = sbr.rel (%p3286_p0) target bundleno = 75 (0x4b), region = 92 }
  0x49   : > { %v829_v0 = vld [vmem:[%s761_s1] sm:$0xff]  ;;  %vm830_vm0 = vcmask 261120  }
  0x4a   : > { %831 = vst.msk [vmem:[#allocation2] sm:$0xff] %vm830_vm0, %v829_v0 }
  0x4b PF: > { %vm833_vm1 = vcmask 261120   ;;  %v3881_v8 = vmov 0.0   ;;  %v867_v9 = vld [vmem:[%s4069_s22 + $0x18] sm:$0xff]  ;;  %v866_v11 = vld [vmem:[%s4069_s22 + $0x10] sm:$0xff]  ;;  %v865_v13 = vld [vmem:[%s4069_s22 + $0x8] sm:$0xff]  ;;  %vm3882_vm2 = vmmov 0  }
  0x4c   : > { %3452 = vmatprep.subr.mxu0 %v3881_v8  ;;  %3485 = vmatprep.subr.mxu1 %v3881_v8  ;;  %v879_v10 = vld [vmem:[%s4069_s22 + $0x78] sm:$0xff]  ;;  %v878_v12 = vld [vmem:[%s4069_s22 + $0x70] sm:$0xff]  ;;  %v877_v14 = vld [vmem:[%s4069_s22 + $0x68] sm:$0xff]  ;;  %s4596_s0 = sld [smem:[#allocation22_spill]]  ;;  %vm1839_vm3 = vcmask 64512   ;;  %s3023_s3 = sshll.u32 %s757_s7, 4  ;;  %s3024_s3 = int_to_ptr.vmem [resolvable:$true] %s3023_s3 }
  0x4d   : > { %3453 = vmatpush3.msra.mxu0 %v867_v9  ;;  %3486 = vmatpush3.msra.mxu1 %v879_v10  ;;  %v864_v15 = vld [vmem:[%s4069_s22] sm:$0xff]  ;;  %s4598_s20 = sld [smem:[#allocation23_spill]]  ;;  %v871_v26 = vld [vmem:[%s4069_s22 + $0x38] sm:$0xff]  ;;  %v870_v28 = vld [vmem:[%s4069_s22 + $0x30] sm:$0xff] }
  0x4e   : > { %3454 = vmatprep.subr.mxu0 %v3881_v8  ;;  %3487 = vmatprep.subr.mxu1 %v3881_v8  ;;  %v876_v16 = vld [vmem:[%s4069_s22 + $0x60] sm:$0xff]  ;;  %v1198_v27 = vld [vmem:[%s4080_s25 + $0x38] sm:$0xff]  ;;  %v1197_v29 = vld [vmem:[%s4080_s25 + $0x30] sm:$0xff]  ;;  %s4603_s21 = sld [smem:[#allocation31_spill]] }
  0x4f   : > { %3455 = vmatpush3.msra.mxu0 %v866_v11  ;;  %3488 = vmatpush3.msra.mxu1 %v878_v12  ;;  %v869_v30 = vld [vmem:[%s4069_s22 + $0x28] sm:$0xff]  ;;  %v868_v32 = vld [vmem:[%s4069_s22 + $0x20] sm:$0xff]  ;;  %v875_v34 = vld [vmem:[%s4069_s22 + $0x58] sm:$0xff]  ;;  %s4605_s27 = sld [smem:[#allocation10_spill]] }
  0x50   : > { %3456 = vmatprep.subr.mxu0 %v3881_v8  ;;  %3489 = vmatprep.subr.mxu1 %v3881_v8  ;;  %v1196_v31 = vld [vmem:[%s4080_s25 + $0x28] sm:$0xff]  ;;  %v1195_v33 = vld [vmem:[%s4080_s25 + $0x20] sm:$0xff]  ;;  %v1206_v35 = vld [vmem:[%s4080_s25 + $0x78] sm:$0xff] }
  0x51   : > { %v4135_v1 = vld [vmem:[#allocation2] sm:$0xff]  ;;  %3457 = vmatpush3.msra.mxu0 %v865_v13  ;;  %3490 = vmatpush3.msra.mxu1 %v877_v14  ;;  %v874_v36 = vld [vmem:[%s4069_s22 + $0x50] sm:$0xff]  ;;  %v873_v38 = vld [vmem:[%s4069_s22 + $0x48] sm:$0xff] }
  0x52   : > { %v834_v2 = vsel %vm833_vm1, %v4135_v1, 0.0  ;;  %3458 = vmatprep.subr.mxu0 %v3881_v8  ;;  %3491 = vmatprep.subr.mxu1 %v3881_v8  ;;  %s4597_s30 = scalar_lea.vmem %s4596_s0, %s4052_s24  ;;  %v1205_v37 = vld [vmem:[%s4080_s25 + $0x70] sm:$0xff]  ;;  %v1204_v39 = vld [vmem:[%s4080_s25 + $0x68] sm:$0xff]  ;;  %v872_v40 = vld [vmem:[%s4069_s22 + $0x40] sm:$0xff]  ;;  %s4600_s22 = sld [smem:[#allocation19_spill]] }
  0x53   : > { %835 = vadd.xlane.f32.xlu0 %v834_v2  ;;  %3459 = vmatpush3.msra.mxu0 %v864_v15  ;;  %v3287_v21 = vld [vmem:[%s4597_s30] ss:$0 sm:$0xff]  ;;  %s4599_s4 = scalar_lea.vmem %s4598_s20, %s4052_s24  ;;  %v1194_v42 = vld [vmem:[%s4080_s25 + $0x18] sm:$0xff]  ;;  %v1193_v44 = vld [vmem:[%s4080_s25 + $0x10] sm:$0xff] }
  0x54   : > { %3492 = vmatpush3.msra.mxu1 %v876_v16  ;;  %3460 = vmatprep.mubr.msk.f32.mxu0 %vm3882_vm2, %v3881_v8  ;;  %v3288_v23 = vld [vmem:[%s4599_s4] ss:$0 sm:$0xff]  ;;  %v1522_v43 = vld [vmem:[%s4090_s17 + $0x38] sm:$0xff]  ;;  %v1521_v45 = vld [vmem:[%s4090_s17 + $0x30] sm:$0xff]  ;;  %s4604_s6 = scalar_lea.vmem %s4603_s21, %s4052_s24 }
  0x55   : > { %3463 = vmatprep.subr.mxu0 %v3881_v8  ;;  %3493 = vmatprep.mubr.msk.f32.mxu1 %vm3882_vm2, %v3881_v8  ;;  %v1203_v41 = vld [vmem:[%s4080_s25 + $0x60] sm:$0xff]  ;;  %v1192_v46 = vld [vmem:[%s4080_s25 + $0x8] sm:$0xff]  ;;  %v1202_v50 = vld [vmem:[%s4080_s25 + $0x58] sm:$0xff] }
  0x56   : > { %3507 = vmatprep.subr.mxu1 %v3881_v8  ;;  %v1520_v47 = vld [vmem:[%s4090_s17 + $0x28] sm:$0xff]  ;;  %v1191_v48 = vld [vmem:[%s4080_s25] sm:$0xff]  ;;  %v1530_v51 = vld [vmem:[%s4090_s17 + $0x78] sm:$0xff] }
  0x57   : > { %v1519_v49 = vld [vmem:[%s4090_s17 + $0x20] sm:$0xff]  ;;  %v1201_v52 = vld [vmem:[%s4080_s25 + $0x50] sm:$0xff]  ;;  %v1200_v54 = vld [vmem:[%s4080_s25 + $0x48] sm:$0xff] }
  0x58   : > { %v1529_v53 = vld [vmem:[%s4090_s17 + $0x70] sm:$0xff]  ;;  %v1528_v55 = vld [vmem:[%s4090_s17 + $0x68] sm:$0xff]  ;;  %v1199_v56 = vld [vmem:[%s4080_s25 + $0x40] sm:$0xff]  ;;  %s3883_s25 = smov [#allocation3]  }
  0x59   : > { %v1527_v57 = vld [vmem:[%s4090_s17 + $0x60] sm:$0xff]  ;;  %v1518_v58 = vld [vmem:[%s4090_s17 + $0x18] sm:$0xff]  ;;  %v1517_v59 = vld [vmem:[%s4090_s17 + $0x10] sm:$0xff] }
  0x5a   : > { %v1516_v60 = vld [vmem:[%s4090_s17 + $0x8] sm:$0xff]  ;;  %v1515_v61 = vld [vmem:[%s4090_s17] sm:$0xff]  ;;  %v1526_v62 = vld [vmem:[%s4090_s17 + $0x58] sm:$0xff] }
  0x5b   : > { %v1525_v63 = vld [vmem:[%s4090_s17 + $0x50] sm:$0xff]  ;;  %v1524_v0 = vld [vmem:[%s4090_s17 + $0x48] sm:$0xff]  ;;  %v1523_v2 = vld [vmem:[%s4090_s17 + $0x40] sm:$0xff]  ;;  %s4601_s17 = sld [smem:[#allocation20_spill]] }
  0x5c   : > { %v3300_v12 = vld [vmem:[%s4085_s28 + $0x3] ss:$0 sm:$0xff] }
  0x5d   : > { %v3292_v15 = vld [vmem:[%s4600_s22 + $0x3] ss:$0 sm:$0xff] }
  0xdc   : > { %v836_v3 = vpop.xlane.xlu0 %835 }
  0xdd   : > { %v838_v4 = vmul.f32 0.03125, %v836_v3 }
  0xdf   : > { %v839_v5 = vsub.f32 %v4135_v1, %v838_v4 }
  0xe1   : > { %v840_v6 = vmul.f32 %v839_v5, %v839_v5 }
  0xe3   : > { %v841_v7 = vsel %vm833_vm1, %v840_v6, 0.0 }
  0xe4   : > { %842 = vadd.xlane.f32.xlu0 %v841_v7 }
 0x16d   : > { %v843_v17 = vpop.xlane.xlu0 %842 }
 0x16e   : > { %v844_v18 = vmul.f32 0.03125, %v843_v17 }
 0x170   : > { %v845_v19 = vadd.f32 1e-05, %v844_v18 }
 0x172   : > { %3763 = vrsqrt.f32 %v845_v19 }
 0x17f   : > { %v3764_v20 = vpop.eup %3763 }
 0x180   : > { %v847_v22 = vmul.f32 %v3764_v20, %v839_v5  ;;  %v3297_v20 = vld [vmem:[%s4085_s28] ss:$0 sm:$0xff] }
 0x182   : > { %v855_v24 = vmul.f32 %v3287_v21, %v847_v22  ;;  %v3306_v21 = vld [vmem:[%s4095_s18 + $0x1] ss:$0 sm:$0xff] }
 0x184   : > { %v4173_v25 = vadd.f32 %v3288_v23, %v855_v24  ;;  %v3289_v23 = vld [vmem:[%s4600_s22] ss:$0 sm:$0xff] }
 0x186   : > { %3461 = vmatmul.mubr.msk.f32.vlgmr.msra.gmra.mxu0 %vm833_vm1, %v4173_v25  ;;  %3494 = vmatmul.mubr.msk.f32.vlgmr.msra.gmra.mxu1 %vm833_vm1, %v4173_v25 }
 0x187   : > { %3464 = vmatpush3.msra.mxu0 %v871_v26  ;;  %3508 = vmatpush3.msra.mxu1 %v1198_v27  ;;  %v3298_v26 = vld [vmem:[%s4085_s28 + $0x1] ss:$0 sm:$0xff] }
 0x188   : > { %3465 = vmatprep.subr.mxu0 %v3881_v8  ;;  %3509 = vmatprep.subr.mxu1 %v3881_v8 }
 0x189   : > { %3466 = vmatpush3.msra.mxu0 %v870_v28  ;;  %3510 = vmatpush3.msra.mxu1 %v1197_v29 }
 0x18a   : > { %3467 = vmatprep.subr.mxu0 %v3881_v8  ;;  %3511 = vmatprep.subr.mxu1 %v3881_v8 }
 0x18b   : > { %3468 = vmatpush3.msra.mxu0 %v869_v30  ;;  %3512 = vmatpush3.msra.mxu1 %v1196_v31  ;;  %v3290_v31 = vld [vmem:[%s4600_s22 + $0x1] ss:$0 sm:$0xff] }
 0x18c   : > { %3469 = vmatprep.subr.mxu0 %v3881_v8  ;;  %3513 = vmatprep.subr.mxu1 %v3881_v8 }
 0x18d   : > { %3470 = vmatpush3.msra.mxu0 %v868_v32  ;;  %3471 = vmatprep.mubr.msk.f32.mxu0 %vm3882_vm2, %v3881_v8 }
 0x18e   : > { %3514 = vmatpush3.msra.mxu1 %v1195_v33  ;;  %3515 = vmatprep.mubr.msk.f32.mxu1 %vm3882_vm2, %v3881_v8 }
 0x18f   : > { %3472 = vmatmul.mubr.msk.f32.vlgmr.msra.gmra.mxu0 %vm833_vm1, %v4173_v25  ;;  %3474 = vmatprep.subr.mxu0 %v3881_v8 }
 0x190   : > { %3516 = vmatmul.mubr.msk.f32.vlgmr.msra.gmra.mxu1 %vm833_vm1, %v4173_v25  ;;  %3529 = vmatprep.subr.mxu1 %v3881_v8 }
 0x191   : > { %3475 = vmatpush3.msra.mxu0 %v875_v34  ;;  %3530 = vmatpush3.msra.mxu1 %v1206_v35  ;;  %v3299_v34 = vld [vmem:[%s4085_s28 + $0x2] ss:$0 sm:$0xff]  ;;  %s3787_s28 = scalar_lea.vmem %s3024_s3, 128 }
 0x192   : > { %3476 = vmatprep.subr.mxu0 %v3881_v8  ;;  %3531 = vmatprep.subr.mxu1 %v3881_v8  ;;  %p3788_p1 = scmp.ne.s32.totalorder %s3024_s3, %s3787_s28 }
 0x193   : > { %3477 = vmatpush3.msra.mxu0 %v874_v36  ;;  %3532 = vmatpush3.msra.mxu1 %v1205_v37  ;;  %v3291_v36 = vld [vmem:[%s4600_s22 + $0x2] ss:$0 sm:$0xff]  ;;  %s4609_s22 = sld [smem:[#allocation34_spill]] }
 0x194   : > { %3478 = vmatprep.subr.mxu0 %v3881_v8  ;;  %3533 = vmatprep.subr.mxu1 %v3881_v8  ;;  %p3789_p2 = pnand %p3788_p1, %p4023_p3 }
 0x195   : > { %3479 = vmatpush3.msra.mxu0 %v873_v38  ;;  %3534 = vmatpush3.msra.mxu1 %v1204_v39 }
 0x196   : > { %3480 = vmatprep.subr.mxu0 %v3881_v8  ;;  %3535 = vmatprep.subr.mxu1 %v3881_v8  ;;  %p3790_p4 = pneg %p3789_p2 }
 0x197   : > { %3481 = vmatpush3.msra.mxu0 %v872_v40  ;;  %3482 = vmatprep.mubr.msk.f32.mxu0 %vm3882_vm2, %v3881_v8 }
 0x198   : > { %3536 = vmatpush3.msra.mxu1 %v1203_v41  ;;  %3537 = vmatprep.mubr.msk.f32.mxu1 %vm3882_vm2, %v3881_v8 }
 0x199   : > { %3483 = vmatmul.mubr.msk.f32.vlgmr.msra.gmra.mxu0 %vm833_vm1, %v4173_v25  ;;  %3496 = vmatprep.subr.mxu0 %v3881_v8 }
 0x19a   : > { %3538 = vmatmul.mubr.msk.f32.vlgmr.msra.gmra.mxu1 %vm833_vm1, %v4173_v25  ;;  %3551 = vmatprep.subr.mxu1 %v3881_v8 }
 0x19b   : > { %3497 = vmatpush3.msra.mxu0 %v1194_v42  ;;  %3552 = vmatpush3.msra.mxu1 %v1522_v43  ;;  %v3305_v42 = vld [vmem:[%s4095_s18] ss:$0 sm:$0xff] }
 0x19c   : > { %3498 = vmatprep.subr.mxu0 %v3881_v8  ;;  %3553 = vmatprep.subr.mxu1 %v3881_v8 }
 0x19d   : > { %3499 = vmatpush3.msra.mxu0 %v1193_v44  ;;  %3554 = vmatpush3.msra.mxu1 %v1521_v45 }
 0x19e   : > { %3500 = vmatprep.subr.mxu0 %v3881_v8  ;;  %3555 = vmatprep.subr.mxu1 %v3881_v8 }
 0x19f   : > { %3501 = vmatpush3.msra.mxu0 %v1192_v46  ;;  %3556 = vmatpush3.msra.mxu1 %v1520_v47 }
 0x1a0   : > { %3502 = vmatprep.subr.mxu0 %v3881_v8  ;;  %3557 = vmatprep.subr.mxu1 %v3881_v8 }
 0x1a1   : > { %3503 = vmatpush3.msra.mxu0 %v1191_v48  ;;  %3504 = vmatprep.mubr.msk.f32.mxu0 %vm3882_vm2, %v3881_v8 }
 0x1a2   : > { %3558 = vmatpush3.msra.mxu1 %v1519_v49  ;;  %3559 = vmatprep.mubr.msk.f32.mxu1 %vm3882_vm2, %v3881_v8 }
 0x1a3   : > { %3505 = vmatmul.mubr.msk.f32.vlgmr.msra.gmra.mxu0 %vm833_vm1, %v4173_v25  ;;  %3518 = vmatprep.subr.mxu0 %v3881_v8 }
 0x1a4   : > { %3560 = vmatmul.mubr.msk.f32.vlgmr.msra.gmra.mxu1 %vm833_vm1, %v4173_v25  ;;  %3573 = vmatprep.subr.mxu1 %v3881_v8 }
 0x1a5   : > { %3519 = vmatpush3.msra.mxu0 %v1202_v50  ;;  %3574 = vmatpush3.msra.mxu1 %v1530_v51 }
 0x1a6   : > { %3520 = vmatprep.subr.mxu0 %v3881_v8  ;;  %3575 = vmatprep.subr.mxu1 %v3881_v8 }
 0x1a7   : > { %3521 = vmatpush3.msra.mxu0 %v1201_v52  ;;  %3576 = vmatpush3.msra.mxu1 %v1529_v53 }
 0x1a8   : > { %3522 = vmatprep.subr.mxu0 %v3881_v8  ;;  %3577 = vmatprep.subr.mxu1 %v3881_v8 }
 0x1a9   : > { %3523 = vmatpush3.msra.mxu0 %v1200_v54  ;;  %3578 = vmatpush3.msra.mxu1 %v1528_v55 }
 0x1aa   : > { %3524 = vmatprep.subr.mxu0 %v3881_v8  ;;  %3579 = vmatprep.subr.mxu1 %v3881_v8 }
 0x1ab   : > { %3525 = vmatpush3.msra.mxu0 %v1199_v56  ;;  %3526 = vmatprep.mubr.msk.f32.mxu0 %vm3882_vm2, %v3881_v8 }
 0x1ac   : > { %3580 = vmatpush3.msra.mxu1 %v1527_v57  ;;  %3581 = vmatprep.mubr.msk.f32.mxu1 %vm3882_vm2, %v3881_v8 }
 0x1ad   : > { %3527 = vmatmul.mubr.msk.f32.vlgmr.msra.gmra.mxu0 %vm833_vm1, %v4173_v25  ;;  %3540 = vmatprep.subr.mxu0 %v3881_v8 }
 0x1ae   : > { %3582 = vmatmul.mubr.msk.f32.vlgmr.msra.gmra.mxu1 %vm833_vm1, %v4173_v25  ;;  %3541 = vmatpush3.msra.mxu0 %v1518_v58 }
 0x1af   : > { %3542 = vmatprep.subr.mxu0 %v3881_v8  ;;  %3548 = vmatprep.mubr.msk.f32.mxu0 %vm3882_vm2, %v3881_v8 }
 0x1b0   : > { %3543 = vmatpush3.msra.mxu0 %v1517_v59  ;;  %3599 = vmatprep.subr.mxu1 %v3881_v8 }
 0x1b1   : > { %3544 = vmatprep.subr.mxu0 %v3881_v8  ;;  %3601 = vmatprep.mubr.msk.f32.mxu1 %vm3882_vm2, %v3881_v8 }
 0x1b2   : > { %3545 = vmatpush3.msra.mxu0 %v1516_v60 }
 0x1b3   : > { %3546 = vmatprep.subr.mxu0 %v3881_v8 }
 0x1b4   : > { %3547 = vmatpush3.msra.mxu0 %v1515_v61 }
 0x1b5   : > { %3549 = vmatmul.mubr.msk.f32.vlgmr.msra.gmra.mxu0 %vm833_vm1, %v4173_v25  ;;  %3562 = vmatprep.subr.mxu0 %v3881_v8 }
 0x1b6   : > { %3563 = vmatpush3.msra.mxu0 %v1526_v62  ;;  %3570 = vmatprep.mubr.msk.f32.mxu0 %vm3882_vm2, %v3881_v8 }
 0x1b7   : > { %3564 = vmatprep.subr.mxu0 %v3881_v8 }
 0x1b8   : > { %3565 = vmatpush3.msra.mxu0 %v1525_v63 }
 0x1b9   : > { %3566 = vmatprep.subr.mxu0 %v3881_v8 }
 0x1ba   : > { %3567 = vmatpush3.msra.mxu0 %v1524_v0 }
 0x1bb   : > { %3568 = vmatprep.subr.mxu0 %v3881_v8 }
 0x1bc   : > { %3569 = vmatpush3.msra.mxu0 %v1523_v2 }
 0x1bd   : > { %3571 = vmatmul.mubr.msk.f32.vlgmr.msra.gmra.mxu0 %vm833_vm1, %v4173_v25  ;;  %3584 = vmatprep.subr.mxu0 %v3881_v8 }
 0x1be   : > { %3586 = vmatprep.mubr.msk.f32.mxu0 %vm3882_vm2, %v3881_v8 }
 0x246   : > { %v977_v3 = vpop.f32.mrf.mxu0  ;;  %v1187_v4 = vpop.f32.mrf.mxu1 }
 0x247   : > { %v1188_v19 = vadd.f32 %v3292_v15, %v1187_v4  ;;  %v978_v30 = vadd.f32 %v3289_v23, %v977_v3 }
 0x248   : > { %v3462_v5 = vpop.f32.mrf.mxu0  ;;  %v3495_v6 = vpop.f32.mrf.mxu1 }
 0x24f   : > { %v1047_v7 = vpop.f32.mrf.mxu0 }
 0x250   : > { %v1371_v9 = vpop.f32.mrf.mxu1  ;;  %v1048_v33 = vadd.f32 %v3290_v31, %v1047_v7 }
 0x251   : > { %v3473_v10 = vpop.f32.mrf.mxu0  ;;  %v1372_v32 = vadd.f32 %v3298_v26, %v1371_v9  ;;  %v3308_v26 = vld [vmem:[%s4095_s18 + $0x3] ss:$0 sm:$0xff] }
 0x252   : > { %v3517_v11 = vpop.f32.mrf.mxu1 }
 0x259   : > { %v1117_v13 = vpop.f32.mrf.mxu0 }
 0x25a   : > { %v1511_v14 = vpop.f32.mrf.mxu1  ;;  %v1118_v41 = vadd.f32 %v3291_v36, %v1117_v13  ;;  %v2482_v36 = vld [vmem:[%s4601_s17 + $0x10] sm:$0xff] }
 0x25b   : > { %v1512_v16 = vadd.f32 %v3300_v12, %v1511_v14  ;;  %v3484_v17 = vpop.f32.mrf.mxu0 }
 0x25c   : > { %v3539_v18 = vpop.f32.mrf.mxu1 }
 0x25d   : > { %3600 = vmatpush3.xpose.msk.msra.mxu1 %vm1839_vm3, %v1512_v16 }
 0x25e   : > { %3609 = vmatprep.subr.mxu1 %v3881_v8 }
 0x260   : > { %3602 = vmatmul.mubr.msk.f32.vlgmr.msra.gmra.mxu1 %vm1839_vm3, %v1188_v19 }
 0x261   : > { %3611 = vmatprep.mubr.msk.f32.mxu1 %vm3882_vm2, %v3881_v8 }
 0x263   : > { %v1301_v22 = vpop.f32.mrf.mxu0 }
 0x264   : > { %v1302_v24 = vadd.f32 %v3297_v20, %v1301_v22  ;;  %v1695_v25 = vpop.f32.mrf.mxu1  ;;  %v3307_v22 = vld [vmem:[%s4095_s18 + $0x2] ss:$0 sm:$0xff]  ;;  %s4602_s18 = scalar_lea.vmem %s4526_s10, %s4052_s24 }
 0x265   : > { %v1696_v27 = vadd.f32 %v3306_v21, %v1695_v25  ;;  %v3506_v28 = vpop.f32.mrf.mxu0 }
 0x266   : > { %v3561_v29 = vpop.f32.mrf.mxu1  ;;  %3585 = vmatpush3.xpose.msk.msra.mxu0 %vm1839_vm3, %v1302_v24 }
 0x267   : > { %3610 = vmatpush3.msra.mxu1 %v1696_v27  ;;  %3589 = vmatprep.subr.mxu0 %v3881_v8 }
 0x268   : > { %3619 = vmatprep.subr.mxu1 %v3881_v8 }
 0x269   : > { %3587 = vmatmul.mubr.msk.f32.vlgmr.msra.gmra.mxu0 %vm1839_vm3, %v978_v30 }
 0x26a   : > { %3590 = vmatpush3.xpose.msk.msra.mxu0 %vm1839_vm3, %v1372_v32  ;;  %3591 = vmatprep.mubr.msk.f32.mxu0 %vm3882_vm2, %v3881_v8 }
 0x26b   : > { %3594 = vmatprep.subr.mxu0 %v3881_v8 }
 0x26d   : > { %v1441_v35 = vpop.f32.mrf.mxu0  ;;  %3592 = vmatmul.mubr.msk.f32.vlgmr.msra.gmra.mxu0 %vm1839_vm3, %v1048_v33 }
 0x26e   : > { %v1442_v37 = vadd.f32 %v3299_v34, %v1441_v35  ;;  %v4326_v38 = vpop.f32.mrf.mxu1  ;;  %3596 = vmatprep.mubr.msk.f32.mxu0 %vm3882_vm2, %v3881_v8  ;;  %v2480_v34 = vld [vmem:[%s4601_s17] sm:$0xff]  ;;  %v2481_v35 = vld [vmem:[%s4601_s17 + $0x8] sm:$0xff] }
 0x26f   : > { %v3528_v39 = vpop.f32.mrf.mxu0  ;;  %v1836_v29 = vadd.f32 %v3308_v26, %v4326_v38  ;;  %v2922_v26 = vld [vmem:[%s4127_s19 + $0x48] sm:$0xff] }
 0x270   : > { %v3583_v40 = vpop.f32.mrf.mxu1  ;;  %3595 = vmatpush3.xpose.msk.msra.mxu0 %vm1839_vm3, %v1442_v37  ;;  %v2483_v39 = vld [vmem:[%s4601_s17 + $0x18] sm:$0xff] }
 0x271   : > { %3604 = vmatprep.subr.mxu0 %v3881_v8 }
 0x273   : > { %3597 = vmatmul.mubr.msk.f32.vlgmr.msra.gmra.mxu0 %vm1839_vm3, %v1118_v41 }
 0x274   : > { %3606 = vmatprep.mubr.msk.f32.mxu0 %vm3882_vm2, %v3881_v8 }
 0x275   : > { %v1625_v43 = vpop.f32.mrf.mxu0 }
 0x276   : > { %v1626_v44 = vadd.f32 %v3305_v42, %v1625_v43 }
 0x277   : > { %v3550_v45 = vpop.f32.mrf.mxu0 }
 0x278   : > { %3605 = vmatpush3.msra.mxu0 %v1626_v44 }
 0x279   : > { %3614 = vmatprep.subr.mxu0 %v3881_v8 }
 0x27d   : > { %v1765_v46 = vpop.f32.mrf.mxu0 }
 0x27e   : > { %v1766_v25 = vadd.f32 %v3307_v22, %v1765_v46  ;;  %v2926_v22 = vld [vmem:[%s4127_s19 + $0x68] sm:$0xff] }
 0x27f   : > { %v3572_v47 = vpop.f32.mrf.mxu0 }
 0x320   : > { %v2140_v48 = vpop.f32.mrf.mxu1 }
 0x321   : > { %v2153_v56 = vsel %vm1839_vm3, %v2140_v48, -inf }
 0x322   : > { %v3603_v49 = vpop.f32.mrf.mxu1 }
 0x329   : > { %v1912_v50 = vpop.f32.mrf.mxu0 }
 0x32a   : > { %v2144_v51 = vsel %vm1839_vm3, %v1912_v50, -inf }
 0x32b   : > { %2145 = vmax.xlane.f32.xlu1 %v2144_v51  ;;  %v3588_v52 = vpop.f32.mrf.mxu0 }
 0x32d   : > { %v1988_v53 = vpop.f32.mrf.mxu0 }
 0x32e   : > { %v2147_v54 = vsel %vm1839_vm3, %v1988_v53, -inf }
 0x32f   : > { %2148 = vmax.xlane.f32.xlu1 %v2147_v54  ;;  %v3593_v55 = vpop.f32.mrf.mxu0 }
 0x333   : > { %v2064_v57 = vpop.f32.mrf.mxu0  ;;  %2154 = vmax.xlane.f32.xlu1 %v2153_v56 }
 0x334   : > { %v2150_v58 = vsel %vm1839_vm3, %v2064_v57, -inf }
 0x335   : > { %2151 = vmax.xlane.f32.xlu0 %v2150_v58  ;;  %v3598_v59 = vpop.f32.mrf.mxu0 }
 0x3b4   : > { %v2146_v60 = vpop.xlane.xlu1 %2145 }
 0x3b5   : > { %v2156_v61 = vsub.f32 %v1912_v50, %v2146_v60 }
 0x3b7   : > { %v2160_v62 = vmul.f32 1.442695, %v2156_v61  ;;  %v3329_v61 = vld [vmem:[%s4602_s18] ss:$0 sm:$0xff]  ;;  %s3791_s18 = sshll.u32 %s3883_s25, 4  ;;  %s3792_s18 = int_to_ptr.vmem [resolvable:$false] %s3791_s18 }
 0x3b8   : > { %v2149_v63 = vpop.xlane.xlu1 %2148  ;;  %s3793_s26 = scalar_lea.vmem %s3792_s18, 256  ;;  %p3794_p5 = scmp.lt.s32.totalorder %s3024_s3, %s3792_s18 }
 0x3b9   : > { %3765 = vpow2.f32 %v2160_v62  ;;  %v2157_v0 = vsub.f32 %v1988_v53, %v2149_v63  ;;  %p3795_p6 = scmp.lt.s32.totalorder %s3793_s26, %s3787_s28 }
 0x3bb   : > { %v2162_v2 = vmul.f32 1.442695, %v2157_v0  ;;  %p3796_p7 = por %p3795_p6, %p3794_p5 }
 0x3bc   : > { %v2155_v3 = vpop.xlane.xlu1 %2154 }
 0x3bd   : > { %3767 = vpow2.f32 %v2162_v2  ;;  %v2159_v4 = vsub.f32 %v2140_v48, %v2155_v3  ;;  %p3797_p8 = pnand %p3796_p7, %p3790_p4 }
 0x3be   : > { %v2152_v5 = vpop.xlane.xlu0 %2151 }
 0x3bf   : > { %v2166_v6 = vmul.f32 1.442695, %v2159_v4  ;;  %v2158_v7 = vsub.f32 %v2064_v57, %v2152_v5 }
 0x3c1   : > { %3769 = vpow2.f32 %v2166_v6  ;;  %v2164_v9 = vmul.f32 1.442695, %v2158_v7  ;;  %v2824_v7 = vld [vmem:[%s4118_s8 + $0x18] sm:$0xff] }
 0x3c3   : > { %3771 = vpow2.f32 %v2164_v9  ;;  %v2823_v9 = vld [vmem:[%s4118_s8 + $0x10] sm:$0xff] }
 0x3c6   : > { %v3766_v10 = vpop.eup %3765 }
 0x3c7   : > { %v2168_v11 = vsel %vm1839_vm3, %v3766_v10, 0.0 }
 0x3c8   : > { %2169 = vadd.xlane.f32.xlu0 %v2168_v11 }
 0x3ca   : > { %v3768_v12 = vpop.eup %3767 }
 0x3cb   : > { %v2171_v13 = vsel %vm1839_vm3, %v3768_v12, 0.0 }
 0x3cc   : > { %2172 = vadd.xlane.f32.xlu1 %v2171_v13 }
 0x3ce   : > { %v3770_v14 = vpop.eup %3769 }
 0x3cf   : > { %v2177_v15 = vsel %vm1839_vm3, %v3770_v14, 0.0 }
 0x3d0   : > { %v3772_v16 = vpop.eup %3771  ;;  %2178 = vadd.xlane.f32.xlu1 %v2177_v15  ;;  %v3330_v15 = vld [vmem:[%s4604_s6] ss:$0 sm:$0xff] }
 0x3d1   : > { %v2174_v17 = vsel %vm1839_vm3, %v3772_v16, 0.0 }
 0x3d2   : > { %2175 = vadd.xlane.f32.xlu0 %v2174_v17  ;;  %v3331_v17 = vld [vmem:[%s808_s2] ss:$0 sm:$0xff] }
 0x451   : > { %v2170_v18 = vpop.xlane.xlu0 %2169 }
 0x452   : > { %3773 = vrcp.f32 %v2170_v18 }
 0x455   : > { %v2173_v19 = vpop.xlane.xlu1 %2172 }
 0x456   : > { %3775 = vrcp.f32 %v2173_v19 }
 0x459   : > { %v2179_v20 = vpop.xlane.xlu1 %2178 }
 0x45a   : > { %3777 = vrcp.f32 %v2179_v20  ;;  %v2928_v20 = vld [vmem:[%s4127_s19 + $0x78] sm:$0xff] }
 0x45b   : > { %v2176_v21 = vpop.xlane.xlu0 %2175 }
 0x45c   : > { %3779 = vrcp.f32 %v2176_v21  ;;  %v2927_v21 = vld [vmem:[%s4127_s19 + $0x70] sm:$0xff] }
 0x45f   : > { %v3774_v23 = vpop.eup %3773 }
 0x460   : > { %v2184_v24 = vmul.f32 %v3774_v23, %v3766_v10  ;;  %v2821_v10 = vld [vmem:[%s4118_s8] sm:$0xff] }
 0x461   : > { %v2925_v23 = vld [vmem:[%s4127_s19 + $0x60] sm:$0xff] }
 0x462   : > { %3607 = vmatmul.mubr.msk.f32.vlgmr.msra.gmra.mxu0 %vm1839_vm3, %v2184_v24  ;;  %v2924_v24 = vld [vmem:[%s4127_s19 + $0x58] sm:$0xff] }
 0x463   : > { %v3776_v27 = vpop.eup %3775  ;;  %3615 = vmatpush3.msra.mxu0 %v1766_v25  ;;  %3616 = vmatprep.mubr.msk.f32.mxu0 %vm3882_vm2, %v3881_v8  ;;  %v2923_v25 = vld [vmem:[%s4127_s19 + $0x50] sm:$0xff] }
 0x464   : > { %v2185_v28 = vmul.f32 %v3776_v27, %v3768_v12  ;;  %3624 = vmatprep.subr.mxu0 %v3881_v8  ;;  %v2921_v27 = vld [vmem:[%s4127_s19 + $0x40] sm:$0xff] }
 0x466   : > { %3612 = vmatmul.mubr.msk.f32.vlgmr.msra.gmra.mxu1 %vm1839_vm3, %v2185_v28  ;;  %v2920_v28 = vld [vmem:[%s4127_s19 + $0x38] sm:$0xff] }
 0x467   : > { %v3778_v30 = vpop.eup %3777  ;;  %3620 = vmatpush3.msra.mxu1 %v1836_v29  ;;  %3621 = vmatprep.mubr.msk.f32.mxu1 %vm3882_vm2, %v3881_v8  ;;  %v2919_v29 = vld [vmem:[%s4127_s19 + $0x30] sm:$0xff] }
 0x468   : > { %v2187_v31 = vmul.f32 %v3778_v30, %v3770_v14  ;;  %3629 = vmatprep.subr.mxu1 %v3881_v8  ;;  %v2918_v30 = vld [vmem:[%s4127_s19 + $0x28] sm:$0xff] }
 0x469   : > { %v3780_v32 = vpop.eup %3779 }
 0x46a   : > { %v2186_v33 = vmul.f32 %v3780_v32, %v3772_v16  ;;  %3622 = vmatmul.mubr.msk.f32.vlgmr.msra.gmra.mxu1 %vm1839_vm3, %v2187_v31  ;;  %v2917_v31 = vld [vmem:[%s4127_s19 + $0x20] sm:$0xff]  ;;  %v2916_v32 = vld [vmem:[%s4127_s19 + $0x18] sm:$0xff] }
 0x46b   : > { %3631 = vmatprep.mubr.msk.f32.mxu1 %vm3882_vm2, %v3881_v8  ;;  %3630 = vmatpush3.msra.mxu1 %v2481_v35  ;;  %v2913_v35 = vld [vmem:[%s4127_s19] sm:$0xff] }
 0x46c   : > { %3617 = vmatmul.mubr.msk.f32.vlgmr.msra.gmra.mxu0 %vm1839_vm3, %v2186_v33  ;;  %3639 = vmatprep.subr.mxu1 %v3881_v8  ;;  %v2915_v33 = vld [vmem:[%s4127_s19 + $0x10] sm:$0xff] }
 0x46d   : > { %3626 = vmatprep.mubr.msk.f32.mxu0 %vm3882_vm2, %v3881_v8  ;;  %3625 = vmatpush3.msra.mxu0 %v2480_v34  ;;  %v2914_v34 = vld [vmem:[%s4127_s19 + $0x8] sm:$0xff]  ;;  %s4606_s19 = sld [smem:[#allocation7_spill]] }
 0x46e   : > { %3634 = vmatprep.subr.mxu0 %v3881_v8 }
 0x522   : > { %v2257_v37 = vpop.f32.mrf.mxu0 }
 0x523   : > { %3627 = vmatmul.mubr.msk.f32.vlgmr.msra.gmra.mxu0 %vm1839_vm3, %v2257_v37 }
 0x524   : > { %v3608_v38 = vpop.f32.mrf.mxu0  ;;  %3635 = vmatpush3.msra.mxu0 %v2482_v36  ;;  %3636 = vmatprep.mubr.msk.f32.mxu0 %vm3882_vm2, %v3881_v8  ;;  %v3332_v36 = vld [vmem:[%s816_s9] ss:$0 sm:$0xff]  ;;  %s3337_s9 = sshll.u32 %s4605_s27, 7 }
 0x525   : > { %3644 = vmatprep.subr.mxu0 %v3881_v8  ;;  %s4464_s17 = scalar_lea.hbm %s4609_s22, %s3337_s9 }
 0x526   : > { %v2330_v40 = vpop.f32.mrf.mxu1 }
 0x527   : > { %3632 = vmatmul.mubr.msk.f32.vlgmr.msra.gmra.mxu1 %vm1839_vm3, %v2330_v40 }
 0x528   : > { %v3613_v41 = vpop.f32.mrf.mxu1  ;;  %3640 = vmatpush3.msra.mxu1 %v2483_v39  ;;  %3641 = vmatprep.mubr.msk.f32.mxu1 %vm3882_vm2, %v3881_v8 }
 0x529   : > { %3655 = vmatprep.subr.mxu1 %v3881_v8 }
 0x52a   : > { %v2476_v42 = vpop.f32.mrf.mxu1 }
 0x52b   : > { %3642 = vmatmul.mubr.msk.f32.vlgmr.msra.gmra.mxu1 %vm1839_vm3, %v2476_v42 }
 0x52c   : > { %v2403_v43 = vpop.f32.mrf.mxu0  ;;  %v3623_v44 = vpop.f32.mrf.mxu1  ;;  %3687 = vmatprep.mubr.msk.f32.mxu1 %vm3882_vm2, %v3881_v8  ;;  %3656 = vmatpush3.msra.mxu1 %v2928_v20 }
 0x52d   : > { %3637 = vmatmul.mubr.msk.f32.vlgmr.msra.gmra.mxu0 %vm1839_vm3, %v2403_v43  ;;  %3657 = vmatprep.subr.mxu1 %v3881_v8 }
 0x52e   : > { %v3618_v45 = vpop.f32.mrf.mxu0  ;;  %3652 = vmatprep.mubr.msk.f32.mxu0 %vm3882_vm2, %v3881_v8  ;;  %3645 = vmatpush3.msra.mxu0 %v2824_v7 }
 0x52f   : > { %3646 = vmatprep.subr.mxu0 %v3881_v8  ;;  %3658 = vmatpush3.msra.mxu1 %v2927_v21  ;;  %v3335_v45 = vld [vmem:[%s824_s11] ss:$0 sm:$0xff]  ;;  %s4610_s11 = sand.u32 1, %s4606_s19  }
 0x530   : > { %3647 = vmatpush3.msra.mxu0 %v2823_v9  ;;  %3659 = vmatprep.subr.mxu1 %v3881_v8  ;;  %s3010_s24 = scalar_lea.sflag [#allocation4], %s4610_s11 }
 0x531   : > { %3648 = vmatprep.subr.mxu0 %v3881_v8  ;;  %3660 = vmatpush3.msra.mxu1 %v2926_v22 }
 0x532   : > { %3661 = vmatprep.subr.mxu1 %v3881_v8 }
 0x533   : > { %3662 = vmatpush3.msra.mxu1 %v2925_v23 }
 0x534   : > { %3663 = vmatprep.subr.mxu1 %v3881_v8 }
 0x535   : > { %3664 = vmatpush3.msra.mxu1 %v2924_v24 }
 0x536   : > { %3665 = vmatprep.subr.mxu1 %v3881_v8 }
 0x537   : > { %3666 = vmatpush3.msra.mxu1 %v2923_v25 }
 0x538   : > { %3667 = vmatprep.subr.mxu1 %v3881_v8 }
 0x539   : > { %3668 = vmatpush3.msra.mxu1 %v2922_v26 }
 0x53a   : > { %3669 = vmatprep.subr.mxu1 %v3881_v8 }
 0x53b   : > { %3670 = vmatpush3.msra.mxu1 %v2921_v27 }
 0x53c   : > { %3671 = vmatprep.subr.mxu1 %v3881_v8 }
 0x53d   : > { %3672 = vmatpush3.msra.mxu1 %v2920_v28 }
 0x53e   : > { %3673 = vmatprep.subr.mxu1 %v3881_v8 }
 0x53f   : > { %3674 = vmatpush3.msra.mxu1 %v2919_v29 }
 0x540   : > { %3675 = vmatprep.subr.mxu1 %v3881_v8 }
 0x541   : > { %3676 = vmatpush3.msra.mxu1 %v2918_v30 }
 0x542   : > { %3677 = vmatprep.subr.mxu1 %v3881_v8 }
 0x543   : > { %3678 = vmatpush3.msra.mxu1 %v2917_v31 }
 0x544   : > { %3679 = vmatprep.subr.mxu1 %v3881_v8 }
 0x545   : > { %3680 = vmatpush3.msra.mxu1 %v2916_v32 }
 0x546   : > { %3681 = vmatprep.subr.mxu1 %v3881_v8 }
 0x547   : > { %3682 = vmatpush3.msra.mxu1 %v2915_v33 }
 0x548   : > { %3683 = vmatprep.subr.mxu1 %v3881_v8 }
 0x549   : > { %3684 = vmatpush3.msra.mxu1 %v2914_v34 }
 0x54a   : > { %3685 = vmatprep.subr.mxu1 %v3881_v8 }
 0x54b   : > { %3686 = vmatpush3.msra.mxu1 %v2913_v35 }
 0x5e3   : > { %v2553_v46 = vpop.f32.mrf.mxu0 }
 0x5e4   : > { %v2776_v52 = vsel %vm833_vm1, %v2553_v46, 0.0 }
 0x5e5   : > { %v3628_v47 = vpop.f32.mrf.mxu0 }
 0x5e7   : > { %v2626_v48 = vpop.f32.mrf.mxu1 }
 0x5e8   : > { %v2777_v50 = vsel %vm833_vm1, %v2626_v48, 0.0 }
 0x5e9   : > { %v3633_v49 = vpop.f32.mrf.mxu1  ;;  %v2778_v53 = vadd.f32 %v2777_v50, %v2776_v52 }
 0x5eb   : > { %v2772_v51 = vpop.f32.mrf.mxu1 }
 0x5ec   : > { %v2781_v59 = vsel %vm833_vm1, %v2772_v51, 0.0 }
 0x5ed   : > { %v2699_v54 = vpop.f32.mrf.mxu0  ;;  %v3643_v55 = vpop.f32.mrf.mxu1 }
 0x5ee   : > { %v2779_v56 = vsel %vm833_vm1, %v2699_v54, 0.0 }
 0x5ef   : > { %v2780_v57 = vadd.f32 %v2779_v56, %v2778_v53  ;;  %v3638_v58 = vpop.f32.mrf.mxu0 }
 0x5f1   : > { %v2782_v60 = vadd.f32 %v2781_v59, %v2780_v57 }
 0x5f3   : > { %v2783_v62 = vadd.f32 %v2782_v60, %v4135_v1  ;;  %v2822_v1 = vld [vmem:[%s4118_s8 + $0x8] sm:$0xff] }
 0x5f4   : > { %3649 = vmatpush3.msra.mxu0 %v2822_v1 }
 0x5f5   : > { %v4392_v63 = vadd.f32 %v3329_v61, %v2783_v62  ;;  %3650 = vmatprep.subr.mxu0 %v3881_v8 }
 0x5f6   : > { %3651 = vmatpush3.msra.mxu0 %v2821_v10 }
 0x5f7   : > { %v2792_v0 = vsel %vm833_vm1, %v4392_v63, 0.0 }
 0x5f8   : > { %2793 = vadd.xlane.f32.xlu0 %v2792_v0 }
 0x681   : > { %v2794_v2 = vpop.xlane.xlu0 %2793 }
 0x682   : > { %v2795_v3 = vmul.f32 0.03125, %v2794_v2 }
 0x684   : > { %v2796_v4 = vsub.f32 %v4392_v63, %v2795_v3 }
 0x686   : > { %v2797_v5 = vmul.f32 %v2796_v4, %v2796_v4 }
 0x688   : > { %v2798_v6 = vsel %vm833_vm1, %v2797_v5, 0.0 }
 0x689   : > { %2799 = vadd.xlane.f32.xlu1 %v2798_v6 }
 0x712   : > { %v2800_v11 = vpop.xlane.xlu1 %2799 }
 0x713   : > { %v2801_v12 = vmul.f32 0.03125, %v2800_v11 }
 0x715   : > { %v2802_v13 = vadd.f32 1e-05, %v2801_v12 }
 0x717   : > { %3781 = vrsqrt.f32 %v2802_v13 }
 0x724   : > { %v3782_v14 = vpop.eup %3781 }
 0x725   : > { %v2804_v16 = vmul.f32 %v3782_v14, %v2796_v4 }
 0x727   : > { %v2812_v18 = vmul.f32 %v3330_v15, %v2804_v16 }
 0x729   : > { %v2820_v19 = vadd.f32 %v3331_v17, %v2812_v18 }
 0x72b   : > { %3653 = vmatmul.mubr.msk.f32.vlgmr.msra.gmra.mxu0 %vm833_vm1, %v2820_v19 }
 0x7eb   : > { %v2901_v37 = vpop.f32.mrf.mxu0 }
 0x7ec   : > { %v2902_v38 = vadd.f32 %v3332_v36, %v2901_v37 }
 0x7ed   : > { %v3654_v39 = vpop.f32.mrf.mxu0 }
 0x7ee   : > { %v3334_v40 = vmul.f32 -1.702, %v2902_v38 }
 0x7f0   : > { %v2907_v41 = vmul.f32 1.442695, %v3334_v40 }
 0x7f2   : > { %3783 = vpow2.f32 %v2907_v41 }
 0x7ff   : > { %v3784_v42 = vpop.eup %3783 }
 0x800   : > { %v2909_v43 = vadd.f32 1.0, %v3784_v42 }
 0x802   : > { %3785 = vrcp.f32 %v2909_v43 }
 0x80f   : > { %v3786_v8 = vpop.eup %3785 }
 0x810   : > { %v2912_v44 = vmul.f32 %v3786_v8, %v2902_v38 }
 0x812   : > { %3688 = vmatmul.mubr.f32.vlgmr.msra.gmra.mxu1 %v2912_v44 }
 0x8d2   : > { %v3002_v46 = vpop.f32.mrf.mxu1 }
 0x8d3   : > { %v3003_v47 = vadd.f32 %v3335_v45, %v3002_v46 }
 0x8d4   : > { %v3689_v48 = vpop.f32.mrf.mxu1 }
 0x8d5   : > { %v3006_v49 = vadd.f32 %v3003_v47, %v4392_v63 }
 0x8d7   : > { %3007 = vst.msk [vmem:[#allocation2] sm:$0xff] %vm833_vm1, %v3006_v49  ;;  %3008 = vst.msk [vmem:[%s757_s7] sm:$0xff] %vm833_vm1, %v3006_v49 }
 0x8d8   : > { %3800 = shalt.err (!%p3797_p8)
}
 0x8d9   : > { %s3801_s29 = scalar_lea.hbm %s4464_s17, 128  ;;  %s3805_s21 = scalar_lea.hbm %s4609_s22, 256 }
 0x8da   : > { %p3802_p10 = scmp.ne.s32.totalorder %s4464_s17, %s3801_s29  ;;  %p3806_p13 = scmp.lt.s32.totalorder %s4464_s17, %s4609_s22 }
 0x8db   : > { %p3807_p0 = scmp.lt.s32.totalorder %s3805_s21, %s3801_s29 }
 0x8dc   : > { %p3803_p11 = pnand %p3802_p10, %p4023_p3 }
 0x8dd   : > { %p3808_p1 = por %p3807_p0, %p3806_p13 }
 0x8de   : > { %p3804_p12 = pneg %p3803_p11 }
 0x8e0   : > { %p3809_p2 = pnand %p3808_p1, %p3804_p12 }
 0x8e2   : > { %3812 = shalt.err (!%p3809_p2)
}
 0x8e3   : > { %3690 = dma.vmem_to_hbm [thread:$0]  (%p4023_p3), %s3024_s3, 128, %s4464_s17, %s3010_s24  }
 0x8e4 PF: > { %s4611_s8 = sld [smem:[#allocation13_spill]] }
 0x8e5   : > { %s4612_s2 = sld [smem:[#allocation6_spill]] }
 0x8ea   : > { %p3696_p4 = scmp.ge.s32.totalorder %s4611_s8, 2 }
 0x8eb   : > { %s3035_s27 = sand.u32 1, %s4612_s2  }
 0x8ec   : > { %p3693_p5 = pnand %p3696_p4, %p4033_p9  ;;  %s3036_s19 = scalar_lea.sflag [#allocation4], %s3035_s27 }
 0x8ee   : > { %p3694_p6 = pneg %p3693_p5 }
 0x8f0   : > { %3846 = dma.done.wait (%p3694_p6), %s3036_s19, 128  }
 0x8f1   : > { %3848 = vsyncadd (%p3694_p6), %s3036_s19, 4294967168  ;;  %s30_s30 = sadd.s32 1, %s4611_s8   ;;  %s4614_s24 = sld [smem:[#allocation7_spill]] }
 0x8f2   : > { %p27_p7 = scmp.ge.s32.totalorder %s30_s30, 6   ;;  %s4615_s25 = sld [smem:[#allocation8_spill]] }
 0x8f3   : > { %s4616_s26 = sld [smem:[#allocation18_spill]] }
 0x8f4   : > { %s4617_s27 = sld [smem:[#allocation11_spill]]  ;;  %29 = sbr.rel (!%p27_p7) target bundleno = 20 (0x14), region = 175 }
 0x8f5   : > { %s4618_s28 = sld [smem:[#allocation12_spill]] }
 0x8f6   : > { %s4619_s29 = sld [smem:[#allocation14_spill]] }
 0x8f7   : > { %s4620_s0 = sld [smem:[#allocation16_spill]] }
 0x8f9   :  { %3041 = vsyncpa [#allocation4], 1 }
 0x8fa   :  { %3043 = vsyncpa [#allocation4 + $0x1], 1 }

</bundles_post_ra>
